<compile_context>
chip_gen: v7x
topology: tpu7x:2x2x1
jax: 0.10.0
libtpu: 0.0.40
codegen_flags: <defaults>
</compile_context>

<pallas_src>
import functools
import math

import jax
import jax.numpy as jnp
from jax.experimental import pallas as pl
from jax.experimental.pallas import tpu as pltpu

EXPERT_OUT = 16   # every expert MLP has output_size=16 in ClassifierMoE
LANE = 128


def _round_up(x, m):
    return (x + m - 1) // m * m


# ----------------------------------------------------------------------------
# Fused MoE kernel: 3 wide matmuls + softmax / log-softmax / gated-sum epilogue.
# ----------------------------------------------------------------------------
def _moe_kernel(xa_ref, xb_ref, w1a_ref, w1b_ref, b1_ref,
                w2_ref, b2_ref, w3_ref, b3_ref,
                out_ref, gate_ref, *, num_source):
    xa = xa_ref[...].astype(jnp.bfloat16)                       # (TB, Da)
    xb = xb_ref[...].astype(jnp.bfloat16)                       # (TB, Db)

    # Layer 1 (gate + all experts fused, concat folded into two matmuls).
    z1 = (jnp.dot(xa, w1a_ref[...], preferred_element_type=jnp.float32)
          + jnp.dot(xb, w1b_ref[...], preferred_element_type=jnp.float32)
          + b1_ref[...])
    a1 = jnp.maximum(z1, 0.0).astype(jnp.bfloat16)              # (TB, (S+1)*128)

    # Layer 2 (block-diagonal: gate + experts in one matmul).
    z2 = jnp.dot(a1, w2_ref[...], preferred_element_type=jnp.float32) + b2_ref[...]
    a2 = jnp.maximum(z2, 0.0).astype(jnp.bfloat16)              # (TB, W2p)

    # Layer 3 (block-diagonal; output block i is 128 lanes wide).
    z3 = jnp.dot(a2, w3_ref[...], preferred_element_type=jnp.float32) + b3_ref[...]
    # z3 layout: block 0 = gate logits (lanes 0..S-1), block s+1 = expert s
    # logits (lanes 0..15); padding lanes are exact zeros.

    TB = out_ref.shape[0]
    lane = jax.lax.broadcasted_iota(jnp.int32, (TB, LANE), 1)
    NEG = jnp.float32(-1e30)

    # ---- gate softmax (exact reciprocal) ------------------------------------
    zg = jnp.where(lane < num_source, z3[:, 0:LANE], NEG)
    zg = zg - jnp.max(zg, axis=-1, keepdims=True)
    eg = jnp.exp(zg)                               # padded lanes underflow to 0
    gate = eg / jnp.sum(eg, axis=-1, keepdims=True)
    gate_ref[...] = gate                           # lane-dense (TB, 128) store

    # ---- expert log-softmax epilogues + gated accumulation (VPU/EUP only) ----
    emask = lane < EXPERT_OUT
    acc = jnp.zeros((TB, LANE), jnp.float32)
    for s in range(num_source):
        blk = z3[:, LANE * (s + 1):LANE * (s + 2)]   # vreg-aligned free view
        zs = jnp.where(emask, blk, NEG)
        m = jnp.max(zs, axis=-1, keepdims=True)
        lse = m + jnp.log(jnp.sum(jnp.exp(zs - m), axis=-1, keepdims=True))
        logp = jnp.where(emask, zs - lse, 0.0)
        acc = acc + gate[:, s:s + 1] * logp
    out_ref[...] = acc                              # lane-dense (TB, 128) store


def moe_head(xa, xb, packed, *, block_rows=512):
    """xa, xb: the two feature halves, (B, Da)/(B, Db) f32.

    Returns (output (B, 16), gate_outs (B, S)) from a single pallas_call."""
    B = xa.shape[0]
    Da, Db = xa.shape[1], xb.shape[1]
    S = packed["w3"].shape[1] // LANE - 1           # static (derived from shape)

    if B <= block_rows:
        TB, Bp = B, B
    else:
        TB = block_rows
        Bp = _round_up(B, TB)
        if Bp != B:
            xa = jnp.pad(xa, ((0, Bp - B), (0, 0)))
            xb = jnp.pad(xb, ((0, Bp - B), (0, 0)))
    grid = (Bp // TB,)

    def wspec(arr):
        return pl.BlockSpec(arr.shape, lambda i: (0, 0))   # resident, DMA'd once

    kernel = functools.partial(_moe_kernel, num_source=S)
    out_pad, gate_pad = pl.pallas_call(
        kernel,
        grid=grid,
        in_specs=[
            pl.BlockSpec((TB, Da), lambda i: (i, 0)),
            pl.BlockSpec((TB, Db), lambda i: (i, 0)),
            wspec(packed["w1a"]), wspec(packed["w1b"]), wspec(packed["b1"]),
            wspec(packed["w2"]), wspec(packed["b2"]),
            wspec(packed["w3"]), wspec(packed["b3"]),
        ],
        out_specs=(pl.BlockSpec((TB, LANE), lambda i: (i, 0)),
                   pl.BlockSpec((TB, LANE), lambda i: (i, 0))),
        out_shape=(jax.ShapeDtypeStruct((Bp, LANE), jnp.float32),
                   jax.ShapeDtypeStruct((Bp, LANE), jnp.float32)),
        compiler_params=pltpu.CompilerParams(
            dimension_semantics=("parallel",)),
    )(xa, xb, packed["w1a"], packed["w1b"], packed["b1"],
      packed["w2"], packed["b2"], packed["w3"], packed["b3"])
    return out_pad[:B, :EXPERT_OUT], gate_pad[:B, :S]


# ----------------------------------------------------------------------------
# Mode-dependent feature mixing (tiny JAX glue) + full forward.
# ----------------------------------------------------------------------------
def classifier_moe_forward(fs, fp, packed, mode=0, sp_w=None, sp_b=None,
                           block_rows=512):
    if mode == 1:
        a1 = fs @ sp_w + sp_b
        a2 = fp @ sp_w + sp_b
        alphas = jax.nn.softmax(jnp.concatenate([a1, a2], axis=-1), axis=-1)
        feats = alphas[:, 0:1] * fs + alphas[:, 1:2] * fp
        h = feats.shape[1] // 2
        xa, xb = feats[:, :h], feats[:, h:]
    elif mode == 2:
        cat = jnp.concatenate([fs, fp], axis=-1)
        alphas = jax.nn.softmax(cat @ sp_w + sp_b, axis=-1)
        xa, xb = fs * alphas[:, 0:1], fp * alphas[:, 1:2]
    else:  # mode 0: the concat is fused into the kernel (no HBM features array)
        xa, xb = fs, fp
    # gate_input = features.detach()  -> identical values in the forward pass.
    return moe_head(xa, xb, packed, block_rows=block_rows)


# ----------------------------------------------------------------------------
# Deterministic synthetic parameters (PyTorch Linear-style init) + packing.
# ----------------------------------------------------------------------------
def _linear_init(key, fan_in, fan_out):
    kw, kb = jax.random.split(key)
    bound = 1.0 / math.sqrt(fan_in)
    w = jax.random.uniform(kw, (fan_in, fan_out), jnp.float32, -bound, bound)
    b = jax.random.uniform(kb, (fan_out,), jnp.float32, -bound, bound)
    return w, b


def _mlp_init(key, d, out_dim):
    h1, h2 = d // 4, d // 16
    k1, k2, k3 = jax.random.split(key, 3)
    return (_linear_init(k1, d, h1), _linear_init(k2, h1, h2),
            _linear_init(k3, h2, out_dim))


def init_params(key, input_size, num_source, mode=0):
    d = input_size if mode != 1 else input_size // 2
    kg, ke, ks = jax.random.split(key, 3)
    gate = _mlp_init(kg, d, num_source)
    experts = [_mlp_init(k, d, EXPERT_OUT)
               for k in jax.random.split(ke, num_source)]
    sp = None
    if mode > 0:
        sp = _linear_init(ks, input_size if mode == 2 else input_size // 2, mode)
    return gate, experts, sp


def pack_params(gate, experts):
    """One-time packing: bf16 (in,out) weights; layer 1 fused wide, layers 2/3
    block-diagonal with 128-lane-padded per-block output strides in layer 3."""
    (gw1, _), (gw2, _), _ = gate
    D, H1 = gw1.shape
    H2 = gw2.shape[1]
    blocks = [gate] + list(experts)
    nblk = len(blocks)
    h1p = _round_up(H1, LANE)
    W1w = nblk * h1p
    W2w = _round_up(nblk * H2, LANE)
    W3w = nblk * LANE

    w1 = jnp.zeros((D, W1w), jnp.float32)
    b1 = jnp.zeros((W1w,), jnp.float32)
    w2 = jnp.zeros((W1w, W2w), jnp.float32)
    b2 = jnp.zeros((W2w,), jnp.float32)
    w3 = jnp.zeros((W2w, W3w), jnp.float32)
    b3 = jnp.zeros((W3w,), jnp.float32)

    for i, ((l1w, l1b), (l2w, l2b), (l3w, l3b)) in enumerate(blocks):
        c1, c2, c3 = i * h1p, i * H2, i * LANE
        oi = l3w.shape[1]
        w1 = w1.at[:, c1:c1 + H1].set(l1w)
        b1 = b1.at[c1:c1 + H1].set(l1b)
        w2 = w2.at[c1:c1 + H1, c2:c2 + H2].set(l2w)
        b2 = b2.at[c2:c2 + H2].set(l2b)
        w3 = w3.at[c2:c2 + H2, c3:c3 + oi].set(l3w)
        b3 = b3.at[c3:c3 + oi].set(l3b)

    Dh = D // 2
    return dict(
        w1a=w1[:Dh].astype(jnp.bfloat16),
        w1b=w1[Dh:].astype(jnp.bfloat16),
        b1=b1.reshape(1, -1),
        w2=w2.astype(jnp.bfloat16), b2=b2.reshape(1, -1),
        w3=w3.astype(jnp.bfloat16), b3=b3.reshape(1, -1),
    )


# ----------------------------------------------------------------------------
# Pure-JAX f32 reference (for correctness check).
# ----------------------------------------------------------------------------
def _mlp_ref(x, layers):
    (w1, b1), (w2, b2), (w3, b3) = layers
    h = jnp.maximum(x @ w1 + b1, 0.0)
    h = jnp.maximum(h @ w2 + b2, 0.0)
    return h @ w3 + b3


def classifier_moe_ref(fs, fp, gate, experts, mode=0, sp=None):
    if mode == 1:
        sp_w, sp_b = sp
        a1 = fs @ sp_w + sp_b
        a2 = fp @ sp_w + sp_b
        alphas = jax.nn.softmax(jnp.concatenate([a1, a2], axis=-1), axis=-1)
        features = alphas[:, 0:1] * fs + alphas[:, 1:2] * fp
    elif mode == 2:
        sp_w, sp_b = sp
        cat = jnp.concatenate([fs, fp], axis=-1)
        alphas = jax.nn.softmax(cat @ sp_w + sp_b, axis=-1)
        features = jnp.concatenate([fs * alphas[:, 0:1], fp * alphas[:, 1:2]],
                                   axis=-1)
    else:
        features = jnp.concatenate([fs, fp], axis=-1)
    g = jax.nn.softmax(_mlp_ref(features, gate), axis=-1)
    logs = jnp.stack(
        [jax.nn.log_softmax(_mlp_ref(features, e), axis=-1) for e in experts],
        axis=-2)
    out = jnp.sum(g[..., None] * logs, axis=-2)
    return out, g


# ----------------------------------------------------------------------------
if __name__ == "__main__":
    key = jax.random.PRNGKey(0)
    key, kfs, kfp, kp, kfs2, kfp2 = jax.random.split(key, 6)

    B = 2
    INPUT_SIZE = 512       # dim of cat([fs, fp]); MLP hiddens = 128, 32
    NUM_SOURCE = 4
    MODE = 0               # default ClassifierMoE mode

    fs = jax.random.normal(kfs, (B, INPUT_SIZE // 2), jnp.float32)
    fp = jax.random.normal(kfp, (B, INPUT_SIZE // 2), jnp.float32)

    gate, experts, sp = init_params(kp, INPUT_SIZE, NUM_SOURCE, mode=MODE)
    packed = pack_params(gate, experts)

    fwd = jax.jit(functools.partial(classifier_moe_forward, mode=MODE))
    out, gate_outs = fwd(fs, fp, packed)
    out, gate_outs = jax.block_until_ready((out, gate_outs))

    assert out.shape == (B, EXPERT_OUT), out.shape
    assert gate_outs.shape == (B, NUM_SOURCE), gate_outs.shape
    assert bool(jnp.all(jnp.isfinite(out)))
    assert bool(jnp.all(jnp.isfinite(gate_outs)))

    # Validate against the f32 reference (kernel matmuls are bf16 w/ f32 acc).
    ref_out, ref_gate = classifier_moe_ref(fs, fp, gate, experts, mode=MODE, sp=sp)
    assert bool(jnp.allclose(gate_outs, ref_gate, atol=5e-2, rtol=5e-2)), (
        float(jnp.max(jnp.abs(gate_outs - ref_gate))))
    assert bool(jnp.allclose(out, ref_out, atol=1e-1, rtol=1e-1)), (
        float(jnp.max(jnp.abs(out - ref_out))))

    # Larger batch exercising the 1-D batch grid (ragged + padded rows).
    B2 = 700
    fs2 = jax.random.normal(kfs2, (B2, INPUT_SIZE // 2), jnp.float32)
    fp2 = jax.random.normal(kfp2, (B2, INPUT_SIZE // 2), jnp.float32)
    fwd2 = jax.jit(functools.partial(classifier_moe_forward, mode=MODE,
                                     block_rows=256))
    out2, gate2 = jax.block_until_ready(fwd2(fs2, fp2, packed))
    ref_out2, ref_gate2 = classifier_moe_ref(fs2, fp2, gate, experts,
                                             mode=MODE, sp=sp)
    assert out2.shape == (B2, EXPERT_OUT) and gate2.shape == (B2, NUM_SOURCE)
    assert bool(jnp.allclose(gate2, ref_gate2, atol=5e-2, rtol=5e-2))
    assert bool(jnp.allclose(out2, ref_out2, atol=1e-1, rtol=1e-1))

    print("KERNEL_OK")
</pallas_src>

<mosaic_0001>
module attributes {stable_mosaic.version = 11 : i64} {
  func.func @_moe_kernel(%arg0: i32, %arg1: memref<2x256xf32, #tpu.memory_space<vmem>>, %arg2: memref<2x256xf32, #tpu.memory_space<vmem>>, %arg3: memref<256x640xbf16, #tpu.memory_space<vmem>>, %arg4: memref<256x640xbf16, #tpu.memory_space<vmem>>, %arg5: memref<1x640xf32, #tpu.memory_space<vmem>>, %arg6: memref<640x256xbf16, #tpu.memory_space<vmem>>, %arg7: memref<1x256xf32, #tpu.memory_space<vmem>>, %arg8: memref<256x640xbf16, #tpu.memory_space<vmem>>, %arg9: memref<1x640xf32, #tpu.memory_space<vmem>>, %arg10: memref<2x128xf32, #tpu.memory_space<vmem>>, %arg11: memref<2x128xf32, #tpu.memory_space<vmem>>) attributes {dimension_semantics = [#tpu.dimension_semantics<parallel>], iteration_bounds = array<i64: 1>, scalar_prefetch = 0 : i64, scratch_operands = 0 : i64, tpu.core_type = #tpu.core_type<tc>, window_params = [{transform_indices = @transform_0, window_bounds = array<i64: 2, 256>}, {transform_indices = @transform_1, window_bounds = array<i64: 2, 256>}, {pipeline_mode = #tpu.pipeline_mode<synchronous>, transform_indices = @transform_2, window_bounds = array<i64: 256, 640>}, {pipeline_mode = #tpu.pipeline_mode<synchronous>, transform_indices = @transform_3, window_bounds = array<i64: 256, 640>}, {pipeline_mode = #tpu.pipeline_mode<synchronous>, transform_indices = @transform_4, window_bounds = array<i64: 1, 640>}, {pipeline_mode = #tpu.pipeline_mode<synchronous>, transform_indices = @transform_5, window_bounds = array<i64: 640, 256>}, {pipeline_mode = #tpu.pipeline_mode<synchronous>, transform_indices = @transform_6, window_bounds = array<i64: 1, 256>}, {pipeline_mode = #tpu.pipeline_mode<synchronous>, transform_indices = @transform_7, window_bounds = array<i64: 256, 640>}, {pipeline_mode = #tpu.pipeline_mode<synchronous>, transform_indices = @transform_8, window_bounds = array<i64: 1, 640>}, {transform_indices = @transform_9, window_bounds = array<i64: 2, 128>}, {transform_indices = @transform_10, window_bounds = array<i64: 2, 128>}]} {
    %c0 = arith.constant 0 : index
    %c0_0 = arith.constant 0 : index
    %0 = vector.load %arg1[%c0, %c0_0] : memref<2x256xf32, #tpu.memory_space<vmem>>, vector<2x256xf32>
    %1 = arith.truncf %0 : vector<2x256xf32> to vector<2x256xbf16>
    %c0_1 = arith.constant 0 : index
    %c0_2 = arith.constant 0 : index
    %2 = vector.load %arg2[%c0_1, %c0_2] : memref<2x256xf32, #tpu.memory_space<vmem>>, vector<2x256xf32>
    %3 = arith.truncf %2 : vector<2x256xf32> to vector<2x256xbf16>
    %c0_3 = arith.constant 0 : index
    %c0_4 = arith.constant 0 : index
    %4 = vector.load %arg3[%c0_3, %c0_4] : memref<256x640xbf16, #tpu.memory_space<vmem>>, vector<256x640xbf16>
    %cst = arith.constant dense<0.000000e+00> : vector<2x640xf32>
    %5 = tpu.matmul %1, %4, %cst {dimension_numbers = #tpu.dot_dimension_numbers<[1], [0], [0], [1], [0, 0, 1, 1], [], []>} : vector<2x256xbf16>, vector<256x640xbf16>, vector<2x640xf32> -> vector<2x640xf32>
    %c0_5 = arith.constant 0 : index
    %c0_6 = arith.constant 0 : index
    %6 = vector.load %arg4[%c0_5, %c0_6] : memref<256x640xbf16, #tpu.memory_space<vmem>>, vector<256x640xbf16>
    %cst_7 = arith.constant dense<0.000000e+00> : vector<2x640xf32>
    %7 = tpu.matmul %3, %6, %cst_7 {dimension_numbers = #tpu.dot_dimension_numbers<[1], [0], [0], [1], [0, 0, 1, 1], [], []>} : vector<2x256xbf16>, vector<256x640xbf16>, vector<2x640xf32> -> vector<2x640xf32>
    %8 = arith.addf %5, %7 : vector<2x640xf32>
    %c0_8 = arith.constant 0 : index
    %c0_9 = arith.constant 0 : index
    %9 = vector.load %arg5[%c0_8, %c0_9] : memref<1x640xf32, #tpu.memory_space<vmem>>, vector<1x640xf32>
    %10 = vector.broadcast %9 : vector<1x640xf32> to vector<2x640xf32>
    %11 = arith.addf %8, %10 : vector<2x640xf32>
    %cst_10 = arith.constant 0.000000e+00 : f32
    %12 = vector.broadcast %cst_10 : f32 to vector<2x640xf32>
    %13 = arith.maximumf %11, %12 : vector<2x640xf32>
    %14 = arith.truncf %13 : vector<2x640xf32> to vector<2x640xbf16>
    %c0_11 = arith.constant 0 : index
    %c0_12 = arith.constant 0 : index
    %15 = vector.load %arg6[%c0_11, %c0_12] : memref<640x256xbf16, #tpu.memory_space<vmem>>, vector<640x256xbf16>
    %cst_13 = arith.constant dense<0.000000e+00> : vector<2x256xf32>
    %16 = tpu.matmul %14, %15, %cst_13 {dimension_numbers = #tpu.dot_dimension_numbers<[1], [0], [0], [1], [0, 0, 1, 1], [], []>} : vector<2x640xbf16>, vector<640x256xbf16>, vector<2x256xf32> -> vector<2x256xf32>
    %c0_14 = arith.constant 0 : index
    %c0_15 = arith.constant 0 : index
    %17 = vector.load %arg7[%c0_14, %c0_15] : memref<1x256xf32, #tpu.memory_space<vmem>>, vector<1x256xf32>
    %18 = vector.broadcast %17 : vector<1x256xf32> to vector<2x256xf32>
    %19 = arith.addf %16, %18 : vector<2x256xf32>
    %cst_16 = arith.constant 0.000000e+00 : f32
    %20 = vector.broadcast %cst_16 : f32 to vector<2x256xf32>
    %21 = arith.maximumf %19, %20 : vector<2x256xf32>
    %22 = arith.truncf %21 : vector<2x256xf32> to vector<2x256xbf16>
    %c0_17 = arith.constant 0 : index
    %c0_18 = arith.constant 0 : index
    %23 = vector.load %arg8[%c0_17, %c0_18] : memref<256x640xbf16, #tpu.memory_space<vmem>>, vector<256x640xbf16>
    %cst_19 = arith.constant dense<0.000000e+00> : vector<2x640xf32>
    %24 = tpu.matmul %22, %23, %cst_19 {dimension_numbers = #tpu.dot_dimension_numbers<[1], [0], [0], [1], [0, 0, 1, 1], [], []>} : vector<2x256xbf16>, vector<256x640xbf16>, vector<2x640xf32> -> vector<2x640xf32>
    %c0_20 = arith.constant 0 : index
    %c0_21 = arith.constant 0 : index
    %25 = vector.load %arg9[%c0_20, %c0_21] : memref<1x640xf32, #tpu.memory_space<vmem>>, vector<1x640xf32>
    %26 = vector.broadcast %25 : vector<1x640xf32> to vector<2x640xf32>
    %27 = arith.addf %24, %26 : vector<2x640xf32>
    %28 = tpu.iota {dimensions = array<i32: 1>} : vector<2x128xi32>
    %c4_i32 = arith.constant 4 : i32
    %29 = vector.broadcast %c4_i32 : i32 to vector<2x128xi32>
    %30 = arith.cmpi slt, %28, %29 : vector<2x128xi32>
    %31 = vector.extract_strided_slice %27 {offsets = [0, 0], sizes = [2, 128], strides = [1, 1]} : vector<2x640xf32> to vector<2x128xf32>
    %cst_22 = arith.constant -1.000000e+30 : f32
    %32 = vector.broadcast %cst_22 : f32 to vector<2x128xf32>
    %33 = arith.select %30, %31, %32 : vector<2x128xi1>, vector<2x128xf32>
    %cst_23 = arith.constant dense<0xFF800000> : vector<2xf32>
    %34 = vector.multi_reduction <maximumf>, %33, %cst_23 [1] : vector<2x128xf32> to vector<2xf32>
    %35 = vector.shape_cast %34 : vector<2xf32> to vector<2x1xf32>
    %36 = vector.broadcast %35 : vector<2x1xf32> to vector<2x128xf32>
    %37 = arith.subf %33, %36 : vector<2x128xf32>
    %38 = math.exp %37 : vector<2x128xf32>
    %cst_24 = arith.constant dense<0.000000e+00> : vector<2xf32>
    %39 = vector.multi_reduction <add>, %38, %cst_24 [1] : vector<2x128xf32> to vector<2xf32>
    %40 = vector.shape_cast %39 : vector<2xf32> to vector<2x1xf32>
    %41 = vector.broadcast %40 : vector<2x1xf32> to vector<2x128xf32>
    %42 = arith.divf %38, %41 : vector<2x128xf32>
    %c0_25 = arith.constant 0 : index
    %c0_26 = arith.constant 0 : index
    %43 = vector.load %arg11[%c0_25, %c0_26] : memref<2x128xf32, #tpu.memory_space<vmem>>, vector<2x128xf32>
    tpu.vector_store %arg11[%c0_25, %c0_26], %42 {strides = array<i32>} : memref<2x128xf32, #tpu.memory_space<vmem>>, vector<2x128xf32>,
    %c16_i32 = arith.constant 16 : i32
    %44 = vector.broadcast %c16_i32 : i32 to vector<2x128xi32>
    %45 = arith.cmpi slt, %28, %44 : vector<2x128xi32>
    %cst_27 = arith.constant 0.000000e+00 : f32
    %46 = vector.broadcast %cst_27 : f32 to vector<2x128xf32>
    %47 = vector.extract_strided_slice %27 {offsets = [0, 128], sizes = [2, 128], strides = [1, 1]} : vector<2x640xf32> to vector<2x128xf32>
    %cst_28 = arith.constant -1.000000e+30 : f32
    %48 = vector.broadcast %cst_28 : f32 to vector<2x128xf32>
    %49 = arith.select %45, %47, %48 : vector<2x128xi1>, vector<2x128xf32>
    %cst_29 = arith.constant dense<0xFF800000> : vector<2xf32>
    %50 = vector.multi_reduction <maximumf>, %49, %cst_29 [1] : vector<2x128xf32> to vector<2xf32>
    %51 = vector.shape_cast %50 : vector<2xf32> to vector<2x1xf32>
    %52 = vector.broadcast %51 : vector<2x1xf32> to vector<2x128xf32>
    %53 = arith.subf %49, %52 : vector<2x128xf32>
    %54 = math.exp %53 : vector<2x128xf32>
    %cst_30 = arith.constant dense<0.000000e+00> : vector<2xf32>
    %55 = vector.multi_reduction <add>, %54, %cst_30 [1] : vector<2x128xf32> to vector<2xf32>
    %56 = vector.shape_cast %55 : vector<2xf32> to vector<2x1xf32>
    %57 = math.log %56 : vector<2x1xf32>
    %58 = arith.addf %51, %57 : vector<2x1xf32>
    %59 = vector.broadcast %58 : vector<2x1xf32> to vector<2x128xf32>
    %60 = arith.subf %49, %59 : vector<2x128xf32>
    %cst_31 = arith.constant 0.000000e+00 : f32
    %61 = vector.broadcast %cst_31 : f32 to vector<2x128xf32>
    %62 = arith.select %45, %60, %61 : vector<2x128xi1>, vector<2x128xf32>
    %63 = vector.extract_strided_slice %42 {offsets = [0, 0], sizes = [2, 1], strides = [1, 1]} : vector<2x128xf32> to vector<2x1xf32>
    %64 = vector.broadcast %63 : vector<2x1xf32> to vector<2x128xf32>
    %65 = arith.mulf %64, %62 : vector<2x128xf32>
    %66 = arith.addf %46, %65 : vector<2x128xf32>
    %67 = vector.extract_strided_slice %27 {offsets = [0, 256], sizes = [2, 128], strides = [1, 1]} : vector<2x640xf32> to vector<2x128xf32>
    %cst_32 = arith.constant -1.000000e+30 : f32
    %68 = vector.broadcast %cst_32 : f32 to vector<2x128xf32>
    %69 = arith.select %45, %67, %68 : vector<2x128xi1>, vector<2x128xf32>
    %cst_33 = arith.constant dense<0xFF800000> : vector<2xf32>
    %70 = vector.multi_reduction <maximumf>, %69, %cst_33 [1] : vector<2x128xf32> to vector<2xf32>
    %71 = vector.shape_cast %70 : vector<2xf32> to vector<2x1xf32>
    %72 = vector.broadcast %71 : vector<2x1xf32> to vector<2x128xf32>
    %73 = arith.subf %69, %72 : vector<2x128xf32>
    %74 = math.exp %73 : vector<2x128xf32>
    %cst_34 = arith.constant dense<0.000000e+00> : vector<2xf32>
    %75 = vector.multi_reduction <add>, %74, %cst_34 [1] : vector<2x128xf32> to vector<2xf32>
    %76 = vector.shape_cast %75 : vector<2xf32> to vector<2x1xf32>
    %77 = math.log %76 : vector<2x1xf32>
    %78 = arith.addf %71, %77 : vector<2x1xf32>
    %79 = vector.broadcast %78 : vector<2x1xf32> to vector<2x128xf32>
    %80 = arith.subf %69, %79 : vector<2x128xf32>
    %cst_35 = arith.constant 0.000000e+00 : f32
    %81 = vector.broadcast %cst_35 : f32 to vector<2x128xf32>
    %82 = arith.select %45, %80, %81 : vector<2x128xi1>, vector<2x128xf32>
    %83 = vector.extract_strided_slice %42 {offsets = [0, 1], sizes = [2, 1], strides = [1, 1]} : vector<2x128xf32> to vector<2x1xf32>
    %84 = vector.broadcast %83 : vector<2x1xf32> to vector<2x128xf32>
    %85 = arith.mulf %84, %82 : vector<2x128xf32>
    %86 = arith.addf %66, %85 : vector<2x128xf32>
    %87 = vector.extract_strided_slice %27 {offsets = [0, 384], sizes = [2, 128], strides = [1, 1]} : vector<2x640xf32> to vector<2x128xf32>
    %cst_36 = arith.constant -1.000000e+30 : f32
    %88 = vector.broadcast %cst_36 : f32 to vector<2x128xf32>
    %89 = arith.select %45, %87, %88 : vector<2x128xi1>, vector<2x128xf32>
    %cst_37 = arith.constant dense<0xFF800000> : vector<2xf32>
    %90 = vector.multi_reduction <maximumf>, %89, %cst_37 [1] : vector<2x128xf32> to vector<2xf32>
    %91 = vector.shape_cast %90 : vector<2xf32> to vector<2x1xf32>
    %92 = vector.broadcast %91 : vector<2x1xf32> to vector<2x128xf32>
    %93 = arith.subf %89, %92 : vector<2x128xf32>
    %94 = math.exp %93 : vector<2x128xf32>
    %cst_38 = arith.constant dense<0.000000e+00> : vector<2xf32>
    %95 = vector.multi_reduction <add>, %94, %cst_38 [1] : vector<2x128xf32> to vector<2xf32>
    %96 = vector.shape_cast %95 : vector<2xf32> to vector<2x1xf32>
    %97 = math.log %96 : vector<2x1xf32>
    %98 = arith.addf %91, %97 : vector<2x1xf32>
    %99 = vector.broadcast %98 : vector<2x1xf32> to vector<2x128xf32>
    %100 = arith.subf %89, %99 : vector<2x128xf32>
    %cst_39 = arith.constant 0.000000e+00 : f32
    %101 = vector.broadcast %cst_39 : f32 to vector<2x128xf32>
    %102 = arith.select %45, %100, %101 : vector<2x128xi1>, vector<2x128xf32>
    %103 = vector.extract_strided_slice %42 {offsets = [0, 2], sizes = [2, 1], strides = [1, 1]} : vector<2x128xf32> to vector<2x1xf32>
    %104 = vector.broadcast %103 : vector<2x1xf32> to vector<2x128xf32>
    %105 = arith.mulf %104, %102 : vector<2x128xf32>
    %106 = arith.addf %86, %105 : vector<2x128xf32>
    %107 = vector.extract_strided_slice %27 {offsets = [0, 512], sizes = [2, 128], strides = [1, 1]} : vector<2x640xf32> to vector<2x128xf32>
    %cst_40 = arith.constant -1.000000e+30 : f32
    %108 = vector.broadcast %cst_40 : f32 to vector<2x128xf32>
    %109 = arith.select %45, %107, %108 : vector<2x128xi1>, vector<2x128xf32>
    %cst_41 = arith.constant dense<0xFF800000> : vector<2xf32>
    %110 = vector.multi_reduction <maximumf>, %109, %cst_41 [1] : vector<2x128xf32> to vector<2xf32>
    %111 = vector.shape_cast %110 : vector<2xf32> to vector<2x1xf32>
    %112 = vector.broadcast %111 : vector<2x1xf32> to vector<2x128xf32>
    %113 = arith.subf %109, %112 : vector<2x128xf32>
    %114 = math.exp %113 : vector<2x128xf32>
    %cst_42 = arith.constant dense<0.000000e+00> : vector<2xf32>
    %115 = vector.multi_reduction <add>, %114, %cst_42 [1] : vector<2x128xf32> to vector<2xf32>
    %116 = vector.shape_cast %115 : vector<2xf32> to vector<2x1xf32>
    %117 = math.log %116 : vector<2x1xf32>
    %118 = arith.addf %111, %117 : vector<2x1xf32>
    %119 = vector.broadcast %118 : vector<2x1xf32> to vector<2x128xf32>
    %120 = arith.subf %109, %119 : vector<2x128xf32>
    %cst_43 = arith.constant 0.000000e+00 : f32
    %121 = vector.broadcast %cst_43 : f32 to vector<2x128xf32>
    %122 = arith.select %45, %120, %121 : vector<2x128xi1>, vector<2x128xf32>
    %123 = vector.extract_strided_slice %42 {offsets = [0, 3], sizes = [2, 1], strides = [1, 1]} : vector<2x128xf32> to vector<2x1xf32>
    %124 = vector.broadcast %123 : vector<2x1xf32> to vector<2x128xf32>
    %125 = arith.mulf %124, %122 : vector<2x128xf32>
    %126 = arith.addf %106, %125 : vector<2x128xf32>
    %c0_44 = arith.constant 0 : index
    %c0_45 = arith.constant 0 : index
    %127 = vector.load %arg10[%c0_44, %c0_45] : memref<2x128xf32, #tpu.memory_space<vmem>>, vector<2x128xf32>
    tpu.vector_store %arg10[%c0_44, %c0_45], %126 {strides = array<i32>} : memref<2x128xf32, #tpu.memory_space<vmem>>, vector<2x128xf32>,
    return
  }
  func.func @transform_0(%arg0: i32) -> (i32, i32) {
    %c0_i32 = arith.constant 0 : i32
    %c0_i32_0 = arith.constant 0 : i32
    return %arg0, %c0_i32 : i32, i32
  }
  func.func @transform_1(%arg0: i32) -> (i32, i32) {
    %c0_i32 = arith.constant 0 : i32
    %c0_i32_0 = arith.constant 0 : i32
    return %arg0, %c0_i32 : i32, i32
  }
  func.func @transform_2(%arg0: i32) -> (i32, i32) {
    %c0_i32 = arith.constant 0 : i32
    %c0_i32_0 = arith.constant 0 : i32
    %c0_i32_1 = arith.constant 0 : i32
    return %c0_i32, %c0_i32_0 : i32, i32
  }
  func.func @transform_3(%arg0: i32) -> (i32, i32) {
    %c0_i32 = arith.constant 0 : i32
    %c0_i32_0 = arith.constant 0 : i32
    %c0_i32_1 = arith.constant 0 : i32
    return %c0_i32, %c0_i32_0 : i32, i32
  }
  func.func @transform_4(%arg0: i32) -> (i32, i32) {
    %c0_i32 = arith.constant 0 : i32
    %c0_i32_0 = arith.constant 0 : i32
    %c0_i32_1 = arith.constant 0 : i32
    return %c0_i32, %c0_i32_0 : i32, i32
  }
  func.func @transform_5(%arg0: i32) -> (i32, i32) {
    %c0_i32 = arith.constant 0 : i32
    %c0_i32_0 = arith.constant 0 : i32
    %c0_i32_1 = arith.constant 0 : i32
    return %c0_i32, %c0_i32_0 : i32, i32
  }
  func.func @transform_6(%arg0: i32) -> (i32, i32) {
    %c0_i32 = arith.constant 0 : i32
    %c0_i32_0 = arith.constant 0 : i32
    %c0_i32_1 = arith.constant 0 : i32
    return %c0_i32, %c0_i32_0 : i32, i32
  }
  func.func @transform_7(%arg0: i32) -> (i32, i32) {
    %c0_i32 = arith.constant 0 : i32
    %c0_i32_0 = arith.constant 0 : i32
    %c0_i32_1 = arith.constant 0 : i32
    return %c0_i32, %c0_i32_0 : i32, i32
  }
  func.func @transform_8(%arg0: i32) -> (i32, i32) {
    %c0_i32 = arith.constant 0 : i32
    %c0_i32_0 = arith.constant 0 : i32
    %c0_i32_1 = arith.constant 0 : i32
    return %c0_i32, %c0_i32_0 : i32, i32
  }
  func.func @transform_9(%arg0: i32) -> (i32, i32) {
    %c0_i32 = arith.constant 0 : i32
    %c0_i32_0 = arith.constant 0 : i32
    return %arg0, %c0_i32 : i32, i32
  }
  func.func @transform_10(%arg0: i32) -> (i32, i32) {
    %c0_i32 = arith.constant 0 : i32
    %c0_i32_0 = arith.constant 0 : i32
    return %arg0, %c0_i32 : i32, i32
  }
}

</mosaic_0001>

<bundles_post_ra>
// kernel: classifier_moe_forward.1
= control target key start
LH: loop header
LB: loop body
LE: loop exit
PB: predicated region body
PF: predicated region fallthrough
CT: control target
= control target key end

     0   :  { %16 = vsyncpa [#allocation3], 0  ;;  %s4326_s0 = inlined_call_operand.hbm [shape: f32[2,256], index: 0, kind: input, shape index: {}]   ;;  %s4327_s1 = inlined_call_operand.hbm [shape: f32[2,256], index: 1, kind: input, shape index: {}]   ;;  %s4328_s2 = inlined_call_operand.hbm [shape: bf16[256,640], index: 2, kind: input, shape index: {}]   ;;  %s4329_s3 = inlined_call_operand.hbm [shape: bf16[256,640], index: 3, kind: input, shape index: {}]   ;;  %s4330_s4 = inlined_call_operand.vmem [shape: f32[1,640], index: 4, kind: input, shape index: {}]   ;;  %s4331_s5 = inlined_call_operand.hbm [shape: bf16[640,256], index: 5, kind: input, shape index: {}]   ;;  %s4332_s6 = inlined_call_operand.hbm [shape: f32[1,256], index: 6, kind: input, shape index: {}]   ;;  %s4333_s7 = inlined_call_operand.hbm [shape: bf16[256,640], index: 7, kind: input, shape index: {}]   ;;  %s4334_s8 = inlined_call_operand.vmem [shape: f32[1,640], index: 8, kind: input, shape index: {}]   ;;  %s4335_s9 = inlined_call_operand.hbm [shape: f32[2,128], index: 9, kind: output, shape index: {0}]   ;;  %s4336_s10 = inlined_call_operand.hbm [shape: f32[2,128], index: 10, kind: output, shape index: {1}]  }
   0x1   :  { %17 = vsyncpa [#allocation6], 0 }
   0x2   :  { %18 = vsyncpa [#allocation9], 0 }
   0x3   :  { %19 = vsyncpa [#allocation12], 0 }
   0x4   :  { %20 = vsyncpa [#allocation4], 0 }
   0x5   :  { %21 = vsyncpa [#allocation16], 0  ;;  %s3986_s13 = smov [#allocation5]   ;;  %s3776_s17 = scalar_lea.hbm %s4327_s1, 64 }
   0x6   :  { %s38_s14 = sshll.u32 %s3986_s13, 4  ;;  %p3777_p0 = scmp.ne.s32.totalorder %s4327_s1, %s3776_s17  ;;  %s39_s14 = int_to_ptr.vmem [resolvable:$true] %s38_s14 }
   0x7   :  { %p3780_p1 = scmp.lt.u32.totalorder %s3776_s17, %s4327_s1 }
   0x9   :  { %p3782_p2 = pnand %p3780_p1, %p3777_p0 }
   0xb   :  { %3785 = shalt.err (!%p3782_p2)
}
   0xc   :  { %s3786_s22 = scalar_lea.vmem %s39_s14, 64  ;;  %p3791_p4 = scmp.lt.s32.totalorder %s39_s14, %s39_s14 }
   0xd   :  { %p3787_p3 = scmp.ne.s32.totalorder %s39_s14, %s3786_s22  ;;  %p3792_p5 = scmp.lt.s32.totalorder %s3786_s22, %s3786_s22 }
   0xf   :  { %p3793_p6 = por %p3792_p5, %p3791_p4 }
  0x11   :  { %p3794_p7 = pnand %p3793_p6, %p3787_p3 }
  0x13   :  { %3797 = shalt.err (!%p3794_p7)
}
  0x14   :  { %41 = dma.hbm_to_vmem [thread:$0]  %s4327_s1, 64, %s39_s14, [#allocation6]  }
  0x15   :  { %s3987_s25 = smov [#allocation8]   ;;  %s3988_s27 = smov [#allocation11]  }
  0x16   :  { %s59_s26 = sshll.u32 %s3987_s25, 4  ;;  %s86_s28 = sshll.u32 %s3988_s27, 4  ;;  %s60_s26 = int_to_ptr.vmem [resolvable:$true] %s59_s26  ;;  %s87_s28 = int_to_ptr.vmem [resolvable:$true] %s86_s28 }
  0x17   :  { %s3798_s11 = scalar_lea.hbm %s4329_s3, 10240 }
  0x18   :  { %p3799_p8 = scmp.ne.s32.totalorder %s4329_s3, %s3798_s11  ;;  %p3802_p9 = scmp.lt.u32.totalorder %s3798_s11, %s4329_s3 }
  0x1a   :  { %p3804_p10 = pnand %p3802_p9, %p3799_p8 }
  0x1c   :  { %3807 = shalt.err (!%p3804_p10)
}
  0x1d   :  { %s3808_s1 = scalar_lea.vmem %s60_s26, 10240  ;;  %p3813_p12 = scmp.lt.s32.totalorder %s60_s26, %s60_s26 }
  0x1e   :  { %p3809_p11 = scmp.ne.s32.totalorder %s60_s26, %s3808_s1  ;;  %p3814_p13 = scmp.lt.s32.totalorder %s3808_s1, %s3808_s1 }
  0x20   :  { %p3815_p0 = por %p3814_p13, %p3813_p12 }
  0x22   :  { %p3816_p1 = pnand %p3815_p0, %p3809_p11 }
  0x24   :  { %3819 = shalt.err (!%p3816_p1)
}
  0x25   :  { %s3989_s14 = smov 320   ;;  %s3990_s17 = smov 20  }
  0x26   :  { %65 = dma.hbm_to_vmem [thread:$0]  %s4329_s3, 10240, %s60_s26, [#allocation9], %s3989_s14, %s3989_s14, %s3990_s17  }
  0x27   :  { %s3820_s22 = scalar_lea.hbm %s4332_s6, 32 }
  0x28   :  { %p3821_p2 = scmp.ne.s32.totalorder %s4332_s6, %s3820_s22  ;;  %p3824_p3 = scmp.lt.u32.totalorder %s3820_s22, %s4332_s6 }
  0x2a   :  { %p3826_p4 = pnand %p3824_p3, %p3821_p2 }
  0x2c   :  { %3829 = shalt.err (!%p3826_p4)
}
  0x2d   :  { %s3830_s29 = scalar_lea.vmem %s87_s28, 32  ;;  %p3835_p6 = scmp.lt.s32.totalorder %s87_s28, %s87_s28 }
  0x2e   :  { %p3831_p5 = scmp.ne.s32.totalorder %s87_s28, %s3830_s29  ;;  %p3836_p7 = scmp.lt.s32.totalorder %s3830_s29, %s3830_s29 }
  0x30   :  { %p3837_p8 = por %p3836_p7, %p3835_p6 }
  0x32   :  { %p3838_p9 = pnand %p3837_p8, %p3831_p5 }
  0x34   :  { %3841 = shalt.err (!%p3838_p9)
}
  0x35   :  { %89 = dma.hbm_to_vmem [thread:$0]  %s4332_s6, 32, %s87_s28, [#allocation12]  }
  0x36   :  { %s3991_s30 = smov [#allocation2]   ;;  %s3992_s12 = smov [#allocation7]  }
  0x37   :  { %s28_s11 = sshll.u32 %s3991_s30, 4  ;;  %s47_s13 = sshll.u32 %s3992_s12, 4  ;;  %s29_s11 = int_to_ptr.vmem [resolvable:$true] %s28_s11  ;;  %s48_s13 = int_to_ptr.vmem [resolvable:$true] %s47_s13 }
  0x38   :  { %s3842_s1 = scalar_lea.hbm %s4326_s0, 64 }
  0x39   :  { %p3843_p10 = scmp.ne.s32.totalorder %s4326_s0, %s3842_s1  ;;  %p3846_p11 = scmp.lt.u32.totalorder %s3842_s1, %s4326_s0 }
  0x3b   :  { %p3848_p12 = pnand %p3846_p11, %p3843_p10 }
  0x3d   :  { %3851 = shalt.err (!%p3848_p12)
}
  0x3e   :  { %s3852_s6 = scalar_lea.vmem %s29_s11, 64  ;;  %p3857_p0 = scmp.lt.s32.totalorder %s29_s11, %s29_s11 }
  0x3f   :  { %p3853_p13 = scmp.ne.s32.totalorder %s29_s11, %s3852_s6  ;;  %p3858_p1 = scmp.lt.s32.totalorder %s3852_s6, %s3852_s6 }
  0x41   :  { %p3859_p2 = por %p3858_p1, %p3857_p0 }
  0x43   :  { %p3860_p3 = pnand %p3859_p2, %p3853_p13 }
  0x45   :  { %3863 = shalt.err (!%p3860_p3)
}
  0x46   :  { %31 = dma.hbm_to_vmem [thread:$0]  %s4326_s0, 64, %s29_s11, [#allocation3]  }
  0x47   :  { %s3864_s25 = scalar_lea.hbm %s4328_s2, 10240 }
  0x48   :  { %p3865_p4 = scmp.ne.s32.totalorder %s4328_s2, %s3864_s25  ;;  %p3868_p5 = scmp.lt.u32.totalorder %s3864_s25, %s4328_s2 }
  0x4a   :  { %p3870_p6 = pnand %p3868_p5, %p3865_p4 }
  0x4c   :  { %3873 = shalt.err (!%p3870_p6)
}
  0x4d   :  { %s3874_s30 = scalar_lea.vmem %s48_s13, 10240  ;;  %p3879_p8 = scmp.lt.s32.totalorder %s48_s13, %s48_s13 }
  0x4e   :  { %p3875_p7 = scmp.ne.s32.totalorder %s48_s13, %s3874_s30  ;;  %p3880_p9 = scmp.lt.s32.totalorder %s3874_s30, %s3874_s30 }
  0x50   :  { %p3881_p10 = por %p3880_p9, %p3879_p8 }
  0x52   :  { %p3882_p11 = pnand %p3881_p10, %p3875_p7 }
  0x54   :  { %3885 = shalt.err (!%p3882_p11)
}
  0x55   :  { %53 = dma.hbm_to_vmem [thread:$0]  %s4328_s2, 10240, %s48_s13, [#allocation6], %s3989_s14, %s3989_s14, %s3990_s17  }
  0x56   :  { %s3993_s12 = smov [#allocation10]   ;;  %s3886_s18 = scalar_lea.hbm %s4331_s5, 10240 }
  0x57   :  { %s73_s15 = sshll.u32 %s3993_s12, 4  ;;  %p3887_p12 = scmp.ne.s32.totalorder %s4331_s5, %s3886_s18  ;;  %s74_s15 = int_to_ptr.vmem [resolvable:$true] %s73_s15 }
  0x58   :  { %p3890_p13 = scmp.lt.u32.totalorder %s3886_s18, %s4331_s5 }
  0x5a   :  { %p3892_p0 = pnand %p3890_p13, %p3887_p12 }
  0x5c   :  { %3895 = shalt.err (!%p3892_p0)
}
  0x5d   :  { %s3896_s28 = scalar_lea.vmem %s74_s15, 10240  ;;  %p3901_p2 = scmp.lt.s32.totalorder %s74_s15, %s74_s15 }
  0x5e   :  { %p3897_p1 = scmp.ne.s32.totalorder %s74_s15, %s3896_s28  ;;  %p3902_p3 = scmp.lt.s32.totalorder %s3896_s28, %s3896_s28 }
  0x60   :  { %p3903_p4 = por %p3902_p3, %p3901_p2 }
  0x62   :  { %p3904_p5 = pnand %p3903_p4, %p3897_p1 }
  0x64   :  { %3907 = shalt.err (!%p3904_p5)
}
  0x65   :  { %s3994_s2 = smov 128   ;;  %s3995_s13 = smov 8  }
  0x66   :  { %79 = dma.hbm_to_vmem [thread:$0]  %s4331_s5, 10240, %s74_s15, [#allocation9], %s3994_s2, %s3994_s2, %s3995_s13  }
  0x67   :  { %s3996_s24 = smov [#allocation13]   ;;  %s3908_s3 = scalar_lea.hbm %s4333_s7, 10240 }
  0x68   :  { %s95_s25 = sshll.u32 %s3996_s24, 4  ;;  %p3909_p6 = scmp.ne.s32.totalorder %s4333_s7, %s3908_s3  ;;  %s96_s25 = int_to_ptr.vmem [resolvable:$true] %s95_s25 }
  0x69   :  { %p3912_p7 = scmp.lt.u32.totalorder %s3908_s3, %s4333_s7 }
  0x6b   :  { %p3914_p8 = pnand %p3912_p7, %p3909_p6 }
  0x6d   :  { %3917 = shalt.err (!%p3914_p8)
}
  0x6e   :  { %s3918_s12 = scalar_lea.vmem %s96_s25, 10240  ;;  %p3923_p10 = scmp.lt.s32.totalorder %s96_s25, %s96_s25 }
  0x6f   :  { %p3919_p9 = scmp.ne.s32.totalorder %s96_s25, %s3918_s12  ;;  %p3924_p11 = scmp.lt.s32.totalorder %s3918_s12, %s3918_s12 }
  0x71   :  { %p3925_p12 = por %p3924_p11, %p3923_p10 }
  0x73   :  { %p3926_p13 = pnand %p3925_p12, %p3919_p9 }
  0x75   :  { %3929 = shalt.err (!%p3926_p13)
}
  0x76   :  { %101 = dma.hbm_to_vmem [thread:$0]  %s4333_s7, 10240, %s96_s25, [#allocation12], %s3989_s14, %s3989_s14, %s3990_s17  }
  0x77   :  { %3974 = dma.done.wait [#allocation3], 64  }
  0x78   :  { %3975 = vsyncadd [#allocation3], 4294967232 }
  0x79   :  { %3976 = dma.done.wait [#allocation6], 10304  }
  0x7a   :  { %3977 = vsyncadd [#allocation6], 4294956992 }
  0x7b   :  { %3978 = dma.done.wait [#allocation9], 20480  }
  0x7c   :  { %3979 = vsyncadd [#allocation9], 4294946816 }
  0x7d   :  { %3980 = dma.done.wait [#allocation12], 10272  }
  0x7e   :  { %3981 = vsyncadd [#allocation12], 4294957024  ;;  %v3300_v0 = vld [vmem:[#allocation8 + $0x4] ss:$20 sps:$4 sm:$0xff]   ;;  %v3302_v1 = vld [vmem:[#allocation8 + $0xc] ss:$20 sps:$4 sm:$0xff]  }
  0x7f   :  { %762 = vmatprep.subr.bf16.mxu0 %v3300_v0  ;;  %v3304_v2 = vld [vmem:[#allocation8] ss:$20 sps:$4 sm:$0xff]   ;;  %v3305_v3 = vld [vmem:[#allocation8 + $0x8] ss:$20 sps:$4 sm:$0xff]   ;;  %803 = vmatprep.subr.bf16.mxu1 %v3302_v1  ;;  %v3311_v7 = vld [vmem:[#allocation8 + $0x30] ss:$20 sps:$4 sm:$0xff]  }
  0x80   :  { %v3306_v4 = vld [vmem:[#allocation8 + $0x2c] ss:$20 sps:$4 sm:$0xff]   ;;  %763 = vmatpush1.bf16.msra.mxu0 %v3304_v2  ;;  %804 = vmatpush1.bf16.msra.mxu1 %v3305_v3  ;;  %v3308_v5 = vld [vmem:[#allocation8 + $0x34] ss:$20 sps:$4 sm:$0xff]   ;;  %v3314_v9 = vld [vmem:[#allocation8 + $0x5c] ss:$20 sps:$4 sm:$0xff]  }
  0x81   :  { %v3310_v6 = vld [vmem:[#allocation8 + $0x28] ss:$20 sps:$4 sm:$0xff]   ;;  %764 = vmatprep.subr.bf16.mxu0 %v3306_v4  ;;  %805 = vmatprep.subr.bf16.mxu1 %v3308_v5  ;;  %v3316_v10 = vld [vmem:[#allocation8 + $0x50] ss:$20 sps:$4 sm:$0xff]   ;;  %v3317_v11 = vld [vmem:[#allocation8 + $0x58] ss:$20 sps:$4 sm:$0xff]  }
  0x82   :  { %v3312_v8 = vld [vmem:[#allocation8 + $0x54] ss:$20 sps:$4 sm:$0xff]   ;;  %v3318_v12 = vld [vmem:[#allocation8 + $0x7c] ss:$20 sps:$4 sm:$0xff]   ;;  %v3320_v13 = vld [vmem:[#allocation8 + $0x84] ss:$20 sps:$4 sm:$0xff]  }
  0x83   :  { %v3322_v14 = vld [vmem:[#allocation8 + $0x78] ss:$20 sps:$4 sm:$0xff]   ;;  %v3323_v15 = vld [vmem:[#allocation8 + $0x80] ss:$20 sps:$4 sm:$0xff]   ;;  %v3329_v19 = vld [vmem:[#allocation8 + $0xa8] ss:$20 sps:$4 sm:$0xff]  }
  0x84   :  { %765 = vmatpush1.bf16.msra.mxu0 %v3310_v6  ;;  %806 = vmatpush1.bf16.msra.mxu1 %v3311_v7  ;;  %v3324_v16 = vld [vmem:[#allocation8 + $0xa4] ss:$20 sps:$4 sm:$0xff]   ;;  %v3326_v17 = vld [vmem:[#allocation8 + $0xac] ss:$20 sps:$4 sm:$0xff]   ;;  %v3332_v21 = vld [vmem:[#allocation8 + $0xd4] ss:$20 sps:$4 sm:$0xff]  }
  0x85   :  { %766 = vmatprep.subr.bf16.mxu0 %v3312_v8  ;;  %807 = vmatprep.subr.bf16.mxu1 %v3314_v9  ;;  %v3328_v18 = vld [vmem:[#allocation8 + $0xa0] ss:$20 sps:$4 sm:$0xff]   ;;  %v3334_v22 = vld [vmem:[#allocation8 + $0xc8] ss:$20 sps:$4 sm:$0xff]   ;;  %v3335_v23 = vld [vmem:[#allocation8 + $0xd0] ss:$20 sps:$4 sm:$0xff]  }
  0x86   :  { %v3330_v20 = vld [vmem:[#allocation8 + $0xcc] ss:$20 sps:$4 sm:$0xff]   ;;  %v3336_v24 = vld [vmem:[#allocation8 + $0xf4] ss:$20 sps:$4 sm:$0xff]   ;;  %v3338_v25 = vld [vmem:[#allocation8 + $0xfc] ss:$20 sps:$4 sm:$0xff]  }
  0x87   :  { %v3340_v26 = vld [vmem:[#allocation8 + $0xf0] ss:$20 sps:$4 sm:$0xff]   ;;  %v3341_v27 = vld [vmem:[#allocation8 + $0xf8] ss:$20 sps:$4 sm:$0xff]   ;;  %v3347_v31 = vld [vmem:[#allocation8 + $0x120] ss:$20 sps:$4 sm:$0xff]  }
  0x88   :  { %767 = vmatpush1.bf16.msra.mxu0 %v3316_v10  ;;  %808 = vmatpush1.bf16.msra.mxu1 %v3317_v11  ;;  %v3342_v28 = vld [vmem:[#allocation8 + $0x11c] ss:$20 sps:$4 sm:$0xff]   ;;  %v3344_v29 = vld [vmem:[#allocation8 + $0x124] ss:$20 sps:$4 sm:$0xff]   ;;  %v3350_v33 = vld [vmem:[#allocation8 + $0x14c] ss:$20 sps:$4 sm:$0xff]  }
  0x89   :  { %768 = vmatprep.subr.bf16.mxu0 %v3318_v12  ;;  %809 = vmatprep.subr.bf16.mxu1 %v3320_v13  ;;  %v3346_v30 = vld [vmem:[#allocation8 + $0x118] ss:$20 sps:$4 sm:$0xff]   ;;  %v3352_v34 = vld [vmem:[#allocation8 + $0x140] ss:$20 sps:$4 sm:$0xff]   ;;  %v3353_v35 = vld [vmem:[#allocation8 + $0x148] ss:$20 sps:$4 sm:$0xff]  }
  0x8a   :  { %v3348_v32 = vld [vmem:[#allocation8 + $0x144] ss:$20 sps:$4 sm:$0xff]   ;;  %v3354_v36 = vld [vmem:[#allocation8 + $0x16c] ss:$20 sps:$4 sm:$0xff]   ;;  %v3356_v37 = vld [vmem:[#allocation8 + $0x174] ss:$20 sps:$4 sm:$0xff]  }
  0x8b   :  { %v3358_v38 = vld [vmem:[#allocation8 + $0x168] ss:$20 sps:$4 sm:$0xff]   ;;  %v3359_v39 = vld [vmem:[#allocation8 + $0x170] ss:$20 sps:$4 sm:$0xff]   ;;  %v3365_v43 = vld [vmem:[#allocation8 + $0x198] ss:$20 sps:$4 sm:$0xff]  }
  0x8c   :  { %769 = vmatpush1.bf16.msra.mxu0 %v3322_v14  ;;  %810 = vmatpush1.bf16.msra.mxu1 %v3323_v15  ;;  %v3360_v40 = vld [vmem:[#allocation8 + $0x194] ss:$20 sps:$4 sm:$0xff]   ;;  %v3362_v41 = vld [vmem:[#allocation8 + $0x19c] ss:$20 sps:$4 sm:$0xff]   ;;  %v3368_v45 = vld [vmem:[#allocation8 + $0x1c4] ss:$20 sps:$4 sm:$0xff]  }
  0x8d   :  { %770 = vmatprep.subr.bf16.mxu0 %v3324_v16  ;;  %811 = vmatprep.subr.bf16.mxu1 %v3326_v17  ;;  %v3364_v42 = vld [vmem:[#allocation8 + $0x190] ss:$20 sps:$4 sm:$0xff]   ;;  %v3370_v46 = vld [vmem:[#allocation8 + $0x1b8] ss:$20 sps:$4 sm:$0xff]   ;;  %v3371_v48 = vld [vmem:[#allocation8 + $0x1c0] ss:$20 sps:$4 sm:$0xff]  }
  0x8e   :  { %v3366_v44 = vld [vmem:[#allocation8 + $0x1bc] ss:$20 sps:$4 sm:$0xff]   ;;  %v3372_v50 = vld [vmem:[#allocation8 + $0x1e4] ss:$20 sps:$4 sm:$0xff]   ;;  %v3374_v51 = vld [vmem:[#allocation8 + $0x1ec] ss:$20 sps:$4 sm:$0xff]  }
  0x8f   :  { %v2881_v47 = vld.sshfl [vmem:[#allocation5] sm:$0x33 pattern:$0x76325410]  ;;  %v3376_v53 = vld [vmem:[#allocation8 + $0x1e0] ss:$20 sps:$4 sm:$0xff]  }
  0x90   :  { %771 = vmatpush1.bf16.msra.mxu0 %v3328_v18  ;;  %812 = vmatpush1.bf16.msra.mxu1 %v3329_v19  ;;  %v149_v49 = vcombine.high %v2881_v47, %v2881_v47  ;;  %v3377_v54 = vld [vmem:[#allocation8 + $0x1e8] ss:$20 sps:$4 sm:$0xff]   ;;  %v3378_v55 = vld [vmem:[#allocation8 + $0x20c] ss:$20 sps:$4 sm:$0xff]   ;;  %v3383_v58 = vld [vmem:[#allocation8 + $0x210] ss:$20 sps:$4 sm:$0xff]   ;;  %v4151_v5 = vpack.c.bf16 %v2881_v47, %v2881_v47 }
  0x91   :  { %772 = vmatprep.subr.bf16.mxu0 %v3330_v20  ;;  %813 = vmatprep.subr.bf16.mxu1 %v3332_v21  ;;  %v3380_v56 = vld [vmem:[#allocation8 + $0x214] ss:$20 sps:$4 sm:$0xff]   ;;  %v3386_v60 = vld [vmem:[#allocation8 + $0x23c] ss:$20 sps:$4 sm:$0xff]   ;;  %v3389_v62 = vld [vmem:[#allocation8 + $0x238] ss:$20 sps:$4 sm:$0xff]  }
  0x92   :  { %v153_v52 = vpack.c.bf16 %v149_v49, %v149_v49  ;;  %v3382_v57 = vld [vmem:[#allocation8 + $0x208] ss:$20 sps:$4 sm:$0xff]   ;;  %v3388_v61 = vld [vmem:[#allocation8 + $0x230] ss:$20 sps:$4 sm:$0xff]   ;;  %v3394_v1 = vld [vmem:[#allocation8 + $0x258] ss:$20 sps:$4 sm:$0xff]  }
  0x93   :  { %v3384_v59 = vld [vmem:[#allocation8 + $0x234] ss:$20 sps:$4 sm:$0xff]   ;;  %v3390_v63 = vld [vmem:[#allocation8 + $0x25c] ss:$20 sps:$4 sm:$0xff]   ;;  %v3392_v0 = vld [vmem:[#allocation8 + $0x264] ss:$20 sps:$4 sm:$0xff]  }
  0x94   :  { %773 = vmatpush1.bf16.msra.mxu0 %v3334_v22  ;;  %814 = vmatpush1.bf16.msra.mxu1 %v3335_v23  ;;  %v3395_v2 = vld [vmem:[#allocation8 + $0x260] ss:$20 sps:$4 sm:$0xff]   ;;  %v3396_v3 = vld [vmem:[#allocation8 + $0x150] ss:$20 sps:$4 sm:$0xff]   ;;  %v3401_v8 = vld [vmem:[#allocation8 + $0x178] ss:$20 sps:$4 sm:$0xff]  }
  0x95   :  { %774 = vmatprep.subr.bf16.mxu0 %v3336_v24  ;;  %815 = vmatprep.subr.bf16.mxu1 %v3338_v25  ;;  %v3399_v4 = vld [vmem:[#allocation7 + $0x4] ss:$20 sps:$4 sm:$0xff]   ;;  %v3397_v6 = vld [vmem:[#allocation7] ss:$20 sps:$4 sm:$0xff]   ;;  %v3402_v10 = vld [vmem:[#allocation7 + $0x28] ss:$20 sps:$4 sm:$0xff]  }
  0x96   :  { %835 = vmatprep.mubr.bf16.mxu1 %v153_v52  ;;  %794 = vmatprep.mubr.bf16.mxu0 %v153_v52  ;;  %v3400_v7 = vld [vmem:[#allocation8 + $0x10] ss:$20 sps:$4 sm:$0xff]   ;;  %v3404_v9 = vld [vmem:[#allocation7 + $0x2c] ss:$20 sps:$4 sm:$0xff]   ;;  %v3409_v13 = vld [vmem:[#allocation7 + $0x54] ss:$20 sps:$4 sm:$0xff]  }
  0x97   :  { %v3405_v11 = vld [vmem:[#allocation8 + $0x38] ss:$20 sps:$4 sm:$0xff]   ;;  %v3406_v12 = vld [vmem:[#allocation8 + $0x1a0] ss:$20 sps:$4 sm:$0xff]   ;;  %v3407_v14 = vld [vmem:[#allocation7 + $0x50] ss:$20 sps:$4 sm:$0xff]  }
  0x98   :  { %775 = vmatpush1.bf16.msra.mxu0 %v3340_v26  ;;  %816 = vmatpush1.bf16.msra.mxu1 %v3341_v27  ;;  %v3410_v15 = vld [vmem:[#allocation8 + $0x60] ss:$20 sps:$4 sm:$0xff]   ;;  %v3411_v16 = vld [vmem:[#allocation8 + $0x1c8] ss:$20 sps:$4 sm:$0xff]   ;;  %v3412_v18 = vld [vmem:[#allocation7 + $0x78] ss:$20 sps:$4 sm:$0xff]  }
  0x99   :  { %776 = vmatprep.subr.bf16.mxu0 %v3342_v28  ;;  %817 = vmatprep.subr.bf16.mxu1 %v3344_v29  ;;  %v3414_v17 = vld [vmem:[#allocation7 + $0x7c] ss:$20 sps:$4 sm:$0xff]   ;;  %v3419_v21 = vld [vmem:[#allocation7 + $0xa4] ss:$20 sps:$4 sm:$0xff]   ;;  %v3417_v22 = vld [vmem:[#allocation7 + $0xa0] ss:$20 sps:$4 sm:$0xff]  }
  0x9a   :  { %v3415_v19 = vld [vmem:[#allocation8 + $0x88] ss:$20 sps:$4 sm:$0xff]   ;;  %v3416_v20 = vld [vmem:[#allocation8 + $0x1f0] ss:$20 sps:$4 sm:$0xff]   ;;  %v3421_v24 = vld [vmem:[#allocation8 + $0x218] ss:$20 sps:$4 sm:$0xff]  }
  0x9b   :  { %v3420_v23 = vld [vmem:[#allocation8 + $0xb0] ss:$20 sps:$4 sm:$0xff]   ;;  %v3424_v25 = vld [vmem:[#allocation7 + $0xcc] ss:$20 sps:$4 sm:$0xff]   ;;  %v3422_v26 = vld [vmem:[#allocation7 + $0xc8] ss:$20 sps:$4 sm:$0xff]  }
  0x9c   :  { %777 = vmatpush1.bf16.msra.mxu0 %v3346_v30  ;;  %818 = vmatpush1.bf16.msra.mxu1 %v3347_v31  ;;  %v3425_v27 = vld [vmem:[#allocation8 + $0xd8] ss:$20 sps:$4 sm:$0xff]   ;;  %v3426_v28 = vld [vmem:[#allocation8 + $0x240] ss:$20 sps:$4 sm:$0xff]   ;;  %v3427_v30 = vld [vmem:[#allocation7 + $0xf0] ss:$20 sps:$4 sm:$0xff]  }
  0x9d   :  { %778 = vmatprep.subr.bf16.mxu0 %v3348_v32  ;;  %819 = vmatprep.subr.bf16.mxu1 %v3350_v33  ;;  %v3429_v29 = vld [vmem:[#allocation7 + $0xf4] ss:$20 sps:$4 sm:$0xff]   ;;  %v3434_v33 = vld [vmem:[#allocation7 + $0x11c] ss:$20 sps:$4 sm:$0xff]   ;;  %vm2748_vm1 = vcmask 1041408  }
  0x9e   :  { %v3430_v31 = vld [vmem:[#allocation8 + $0x100] ss:$20 sps:$4 sm:$0xff]   ;;  %v3431_v32 = vld [vmem:[#allocation8 + $0x268] ss:$20 sps:$4 sm:$0xff]   ;;  %v3448_v49 = vld [vmem:[#allocation7 + $0x190] ss:$20 sps:$4 sm:$0xff]  }
  0x9f   :  { %v3450_v47 = vld [vmem:[#allocation7 + $0x194] ss:$20 sps:$4 sm:$0xff]  }
  0xa0   :  { %779 = vmatpush1.bf16.msra.mxu0 %v3352_v34  ;;  %820 = vmatpush1.bf16.msra.mxu1 %v3353_v35  ;;  %v3432_v34 = vld [vmem:[#allocation7 + $0x118] ss:$20 sps:$4 sm:$0xff]   ;;  %v3435_v35 = vld [vmem:[#allocation8 + $0x128] ss:$20 sps:$4 sm:$0xff]  }
  0xa1   :  { %780 = vmatprep.subr.bf16.mxu0 %v3354_v36  ;;  %821 = vmatprep.subr.bf16.mxu1 %v3356_v37  ;;  %v4155_v36 = vld.sshfl [vmem:[#allocation2] sm:$0x33 pattern:$0x76325410] }
  0xa2   :  { %v3438_v37 = vld [vmem:[#allocation7 + $0x144] ss:$20 sps:$4 sm:$0xff]  }
  0xa4   :  { %781 = vmatpush1.bf16.msra.mxu0 %v3358_v38  ;;  %822 = vmatpush1.bf16.msra.mxu1 %v3359_v39  ;;  %v135_v38 = vcombine.high %v4155_v36, %v4155_v36  ;;  %v3441_v39 = vld [vmem:[#allocation7 + $0xc] ss:$20 sps:$4 sm:$0xff]  }
  0xa5   :  { %782 = vmatprep.subr.bf16.mxu0 %v3360_v40  ;;  %823 = vmatprep.subr.bf16.mxu1 %v3362_v41  ;;  %v3436_v41 = vld [vmem:[#allocation7 + $0x140] ss:$20 sps:$4 sm:$0xff]  }
  0xa6   :  { %v4159_v40 = vpack.c.bf16 %v135_v38, %v135_v38  ;;  %v3519_v38 = vld [vmem:[#allocation7 + $0x260] ss:$20 sps:$4 sm:$0xff]  }
  0xa8   :  { %783 = vmatpush1.bf16.msra.mxu0 %v3364_v42  ;;  %824 = vmatpush1.bf16.msra.mxu1 %v3365_v43  ;;  %v3439_v42 = vld [vmem:[#allocation7 + $0x8] ss:$20 sps:$4 sm:$0xff]   ;;  %v3444_v43 = vld [vmem:[#allocation7 + $0x16c] ss:$20 sps:$4 sm:$0xff]  }
  0xa9   :  { %784 = vmatprep.subr.bf16.mxu0 %v3366_v44  ;;  %825 = vmatprep.subr.bf16.mxu1 %v3368_v45  ;;  %v3447_v44 = vld [vmem:[#allocation7 + $0x34] ss:$20 sps:$4 sm:$0xff]  }
  0xaa   :  { %v3442_v45 = vld [vmem:[#allocation7 + $0x168] ss:$20 sps:$4 sm:$0xff]  }
  0xac   :  { %785 = vmatpush1.bf16.msra.mxu0 %v3370_v46  ;;  %826 = vmatpush1.bf16.msra.mxu1 %v3371_v48  ;;  %v3445_v46 = vld [vmem:[#allocation7 + $0x30] ss:$20 sps:$4 sm:$0xff]  }
  0xad   :  { %786 = vmatprep.subr.bf16.mxu0 %v3372_v50  ;;  %827 = vmatprep.subr.bf16.mxu1 %v3374_v51  ;;  %v3453_v48 = vld [vmem:[#allocation7 + $0x5c] ss:$20 sps:$4 sm:$0xff]   ;;  %v3451_v50 = vld [vmem:[#allocation7 + $0x58] ss:$20 sps:$4 sm:$0xff]  }
  0xae   :  { %v3456_v51 = vld [vmem:[#allocation7 + $0x1bc] ss:$20 sps:$4 sm:$0xff]  }
  0xb0   :  { %787 = vmatpush1.bf16.msra.mxu0 %v3376_v53  ;;  %828 = vmatpush1.bf16.msra.mxu1 %v3377_v54  ;;  %v3454_v53 = vld [vmem:[#allocation7 + $0x1b8] ss:$20 sps:$4 sm:$0xff]   ;;  %v3457_v54 = vld [vmem:[#allocation7 + $0x80] ss:$20 sps:$4 sm:$0xff]  }
  0xb1   :  { %788 = vmatprep.subr.bf16.mxu0 %v3378_v55  ;;  %829 = vmatprep.subr.bf16.mxu1 %v3380_v56  ;;  %v3462_v55 = vld [vmem:[#allocation7 + $0x1e4] ss:$20 sps:$4 sm:$0xff]   ;;  %v3465_v56 = vld [vmem:[#allocation7 + $0xac] ss:$20 sps:$4 sm:$0xff]  }
  0xb4   :  { %789 = vmatpush1.bf16.msra.mxu0 %v3382_v57  ;;  %830 = vmatpush1.bf16.msra.mxu1 %v3383_v58  ;;  %v3460_v57 = vld [vmem:[#allocation7 + $0x1e0] ss:$20 sps:$4 sm:$0xff]   ;;  %v3463_v58 = vld [vmem:[#allocation7 + $0xa8] ss:$20 sps:$4 sm:$0xff]  }
  0xb5   :  { %790 = vmatprep.subr.bf16.mxu0 %v3384_v59  ;;  %831 = vmatprep.subr.bf16.mxu1 %v3386_v60  ;;  %v3468_v59 = vld [vmem:[#allocation7 + $0x20c] ss:$20 sps:$4 sm:$0xff]   ;;  %v3471_v60 = vld [vmem:[#allocation7 + $0xd4] ss:$20 sps:$4 sm:$0xff]  }
  0xb8   :  { %791 = vmatpush1.bf16.msra.mxu0 %v3388_v61  ;;  %832 = vmatpush1.bf16.msra.mxu1 %v3389_v62  ;;  %v3466_v61 = vld [vmem:[#allocation7 + $0x208] ss:$20 sps:$4 sm:$0xff]   ;;  %v3469_v62 = vld [vmem:[#allocation7 + $0xd0] ss:$20 sps:$4 sm:$0xff]  }
  0xb9   :  { %792 = vmatprep.subr.bf16.mxu0 %v3390_v63  ;;  %833 = vmatprep.subr.bf16.mxu1 %v3392_v0  ;;  %v3474_v63 = vld [vmem:[#allocation7 + $0x234] ss:$20 sps:$4 sm:$0xff]   ;;  %v3477_v0 = vld [vmem:[#allocation7 + $0xfc] ss:$20 sps:$4 sm:$0xff]  }
  0xbc   :  { %793 = vmatpush1.bf16.msra.mxu0 %v3394_v1  ;;  %834 = vmatpush1.bf16.msra.mxu1 %v3395_v2  ;;  %v3472_v1 = vld [vmem:[#allocation7 + $0x230] ss:$20 sps:$4 sm:$0xff]   ;;  %v3475_v2 = vld [vmem:[#allocation7 + $0xf8] ss:$20 sps:$4 sm:$0xff]  }
  0xbd   :  { %3202 = vmatprep.subr.bf16.mxu0 %v3396_v3  ;;  %1300 = vmatprep.subr.bf16.mxu1 %v3399_v4  ;;  %v3480_v3 = vld [vmem:[#allocation7 + $0x25c] ss:$20 sps:$4 sm:$0xff]   ;;  %v3483_v4 = vld [vmem:[#allocation7 + $0x124] ss:$20 sps:$4 sm:$0xff]  }
  0xbf   :  { %836 = vmatmul.mubr.bf16.vlgmr.msra.gmra.mrb[0].mxu1 %v4151_v5  ;;  %795 = vmatmul.mubr.bf16.vlgmr.msra.gmra.mrb[0].mxu0 %v4151_v5 }
  0xc0   :  { %3203 = vmatpush3.bf16.msra.mxu0 %v3400_v7  ;;  %1301 = vmatpush1.bf16.msra.mxu1 %v3397_v6  ;;  %v3481_v6 = vld [vmem:[#allocation7 + $0x120] ss:$20 sps:$4 sm:$0xff]  }
  0xc1   :  { %3204 = vmatprep.subr.bf16.mxu0 %v3401_v8  ;;  %1302 = vmatprep.subr.bf16.mxu1 %v3404_v9  ;;  %v3486_v7 = vld [vmem:[#allocation7 + $0x14c] ss:$20 sps:$4 sm:$0xff]   ;;  %v3487_v8 = vld [vmem:[#allocation7 + $0x150] ss:$20 sps:$4 sm:$0xff]   ;;  %v3484_v9 = vld [vmem:[#allocation7 + $0x148] ss:$20 sps:$4 sm:$0xff]  }
  0xc2   :  { %876 = vmatprep.mubr.bf16.mxu0 %v153_v52  ;;  %1332 = vmatprep.mubr.bf16.mxu1 %v4159_v40  ;;  %v3459_v52 = vld [vmem:[#allocation7 + $0x84] ss:$20 sps:$4 sm:$0xff]  }
  0xc4   :  { %3205 = vmatpush3.bf16.msra.mxu0 %v3405_v11  ;;  %1303 = vmatpush1.bf16.msra.mxu1 %v3402_v10  ;;  %v3488_v10 = vld [vmem:[#allocation7 + $0x10] ss:$20 sps:$4 sm:$0xff]   ;;  %v4166_v11 = vpack.c.bf16 %v4155_v36, %v4155_v36 }
  0xc5   :  { %3206 = vmatprep.subr.bf16.mxu0 %v3406_v12  ;;  %1304 = vmatprep.subr.bf16.mxu1 %v3409_v13  ;;  %v3491_v12 = vld [vmem:[#allocation7 + $0x174] ss:$20 sps:$4 sm:$0xff]   ;;  %v3492_v13 = vld [vmem:[#allocation7 + $0x178] ss:$20 sps:$4 sm:$0xff]  }
  0xc6   :  { %v3521_v36 = vld [vmem:[#allocation7 + $0x264] ss:$20 sps:$4 sm:$0xff]  }
  0xc8   :  { %3207 = vmatpush3.bf16.msra.mxu0 %v3410_v15  ;;  %1305 = vmatpush1.bf16.msra.mxu1 %v3407_v14  ;;  %v3489_v14 = vld [vmem:[#allocation7 + $0x170] ss:$20 sps:$4 sm:$0xff]   ;;  %v3493_v15 = vld [vmem:[#allocation7 + $0x38] ss:$20 sps:$4 sm:$0xff]  }
  0xc9   :  { %3208 = vmatprep.subr.bf16.mxu0 %v3411_v16  ;;  %1306 = vmatprep.subr.bf16.mxu1 %v3414_v17  ;;  %v3496_v16 = vld [vmem:[#allocation7 + $0x19c] ss:$20 sps:$4 sm:$0xff]   ;;  %v3497_v17 = vld [vmem:[#allocation7 + $0x1a0] ss:$20 sps:$4 sm:$0xff]  }
  0xcc   :  { %3209 = vmatpush3.bf16.msra.mxu0 %v3415_v19  ;;  %1307 = vmatpush1.bf16.msra.mxu1 %v3412_v18  ;;  %v3494_v18 = vld [vmem:[#allocation7 + $0x198] ss:$20 sps:$4 sm:$0xff]   ;;  %v3498_v19 = vld [vmem:[#allocation7 + $0x60] ss:$20 sps:$4 sm:$0xff]  }
  0xcd   :  { %3210 = vmatprep.subr.bf16.mxu0 %v3416_v20  ;;  %1308 = vmatprep.subr.bf16.mxu1 %v3419_v21  ;;  %v3501_v20 = vld [vmem:[#allocation7 + $0x1c4] ss:$20 sps:$4 sm:$0xff]   ;;  %v3502_v21 = vld [vmem:[#allocation7 + $0x1c8] ss:$20 sps:$4 sm:$0xff]  }
  0xd0   :  { %3211 = vmatpush3.bf16.msra.mxu0 %v3420_v23  ;;  %1309 = vmatpush1.bf16.msra.mxu1 %v3417_v22  ;;  %v3499_v22 = vld [vmem:[#allocation7 + $0x1c0] ss:$20 sps:$4 sm:$0xff]   ;;  %v3503_v23 = vld [vmem:[#allocation7 + $0x88] ss:$20 sps:$4 sm:$0xff]  }
  0xd1   :  { %3212 = vmatprep.subr.bf16.mxu0 %v3421_v24  ;;  %1310 = vmatprep.subr.bf16.mxu1 %v3424_v25  ;;  %v3506_v24 = vld [vmem:[#allocation7 + $0x1ec] ss:$20 sps:$4 sm:$0xff]   ;;  %v3507_v25 = vld [vmem:[#allocation7 + $0x1f0] ss:$20 sps:$4 sm:$0xff]  }
  0xd4   :  { %3213 = vmatpush3.bf16.msra.mxu0 %v3425_v27  ;;  %1311 = vmatpush1.bf16.msra.mxu1 %v3422_v26  ;;  %v3504_v26 = vld [vmem:[#allocation7 + $0x1e8] ss:$20 sps:$4 sm:$0xff]   ;;  %v3508_v27 = vld [vmem:[#allocation7 + $0xb0] ss:$20 sps:$4 sm:$0xff]  }
  0xd5   :  { %3214 = vmatprep.subr.bf16.mxu0 %v3426_v28  ;;  %1312 = vmatprep.subr.bf16.mxu1 %v3429_v29  ;;  %v3511_v28 = vld [vmem:[#allocation7 + $0x214] ss:$20 sps:$4 sm:$0xff]   ;;  %v3512_v29 = vld [vmem:[#allocation7 + $0x218] ss:$20 sps:$4 sm:$0xff]  }
  0xd8   :  { %3215 = vmatpush3.bf16.msra.mxu0 %v3430_v31  ;;  %1313 = vmatpush1.bf16.msra.mxu1 %v3427_v30  ;;  %v3509_v30 = vld [vmem:[#allocation7 + $0x210] ss:$20 sps:$4 sm:$0xff]   ;;  %v3513_v31 = vld [vmem:[#allocation7 + $0xd8] ss:$20 sps:$4 sm:$0xff]  }
  0xd9   :  { %3216 = vmatprep.subr.bf16.mxu0 %v3431_v32  ;;  %1314 = vmatprep.subr.bf16.mxu1 %v3434_v33  ;;  %v3516_v32 = vld [vmem:[#allocation7 + $0x23c] ss:$20 sps:$4 sm:$0xff]   ;;  %v3517_v33 = vld [vmem:[#allocation7 + $0x240] ss:$20 sps:$4 sm:$0xff]  }
  0xdc   :  { %3217 = vmatpush3.bf16.msra.mxu0 %v3435_v35  ;;  %1315 = vmatpush1.bf16.msra.mxu1 %v3432_v34  ;;  %v3514_v34 = vld [vmem:[#allocation7 + $0x238] ss:$20 sps:$4 sm:$0xff]   ;;  %v3518_v35 = vld [vmem:[#allocation7 + $0x100] ss:$20 sps:$4 sm:$0xff]  }
  0xdd   :  { %1316 = vmatprep.subr.bf16.mxu1 %v3438_v37  ;;  %1341 = vmatprep.subr.bf16.mxu0 %v3441_v39  ;;  %v3522_v37 = vld [vmem:[#allocation7 + $0x268] ss:$20 sps:$4 sm:$0xff]  }
  0xde   :  { %v3523_v39 = vld [vmem:[#allocation7 + $0x128] ss:$20 sps:$4 sm:$0xff]  }
  0xdf   :  { %877 = vmatmul.mubr.bf16.vlgmr.msra.gmra.mrb[4].mxu0 %v4151_v5  ;;  %v3478_v5 = vld [vmem:[#allocation7 + $0x258] ss:$20 sps:$4 sm:$0xff]  }
  0xe0   :  { %1317 = vmatpush1.bf16.msra.mxu1 %v3436_v41  ;;  %1342 = vmatpush1.bf16.msra.mxu0 %v3439_v42  ;;  %v3524_v41 = vld [vmem:[#allocation10] ss:$8 sps:$4 sm:$0xff]   ;;  %v3529_v42 = vld [vmem:[#allocation10 + $0x14] ss:$8 sps:$4 sm:$0xff]  }
  0xe1   :  { %1318 = vmatprep.subr.bf16.mxu1 %v3444_v43  ;;  %1343 = vmatprep.subr.bf16.mxu0 %v3447_v44  ;;  %v3527_v43 = vld [vmem:[#allocation10 + $0x10] ss:$8 sps:$4 sm:$0xff]   ;;  %v3532_v44 = vld [vmem:[#allocation10 + $0x24] ss:$8 sps:$4 sm:$0xff]  }
  0xe2   :  { %1373 = vmatprep.mubr.bf16.mxu0 %v4159_v40 }
  0xe4   :  { %1319 = vmatpush1.bf16.msra.mxu1 %v3442_v45  ;;  %1344 = vmatpush1.bf16.msra.mxu0 %v3445_v46  ;;  %v3530_v45 = vld [vmem:[#allocation10 + $0x20] ss:$8 sps:$4 sm:$0xff]   ;;  %v3535_v46 = vld [vmem:[#allocation10 + $0x34] ss:$8 sps:$4 sm:$0xff]  }
  0xe5   :  { %1320 = vmatprep.subr.bf16.mxu1 %v3450_v47  ;;  %1345 = vmatprep.subr.bf16.mxu0 %v3453_v48  ;;  %v3533_v47 = vld [vmem:[#allocation10 + $0x30] ss:$8 sps:$4 sm:$0xff]   ;;  %v3538_v48 = vld [vmem:[#allocation10 + $0x44] ss:$8 sps:$4 sm:$0xff]  }
  0xe8   :  { %1321 = vmatpush1.bf16.msra.mxu1 %v3448_v49  ;;  %1346 = vmatpush1.bf16.msra.mxu0 %v3451_v50  ;;  %v3536_v49 = vld [vmem:[#allocation10 + $0x40] ss:$8 sps:$4 sm:$0xff]   ;;  %v3541_v50 = vld [vmem:[#allocation10 + $0x54] ss:$8 sps:$4 sm:$0xff]  }
  0xe9   :  { %1322 = vmatprep.subr.bf16.mxu1 %v3456_v51  ;;  %1347 = vmatprep.subr.bf16.mxu0 %v3459_v52  ;;  %v3539_v51 = vld [vmem:[#allocation10 + $0x50] ss:$8 sps:$4 sm:$0xff]   ;;  %v3544_v52 = vld [vmem:[#allocation10 + $0x64] ss:$8 sps:$4 sm:$0xff]  }
  0xec   :  { %1323 = vmatpush1.bf16.msra.mxu1 %v3454_v53  ;;  %1348 = vmatpush1.bf16.msra.mxu0 %v3457_v54  ;;  %v3542_v53 = vld [vmem:[#allocation10 + $0x60] ss:$8 sps:$4 sm:$0xff]   ;;  %v3547_v54 = vld [vmem:[#allocation10 + $0x74] ss:$8 sps:$4 sm:$0xff]  }
  0xed   :  { %1324 = vmatprep.subr.bf16.mxu1 %v3462_v55  ;;  %1349 = vmatprep.subr.bf16.mxu0 %v3465_v56  ;;  %v3545_v55 = vld [vmem:[#allocation10 + $0x70] ss:$8 sps:$4 sm:$0xff]   ;;  %v3550_v56 = vld [vmem:[#allocation10 + $0x84] ss:$8 sps:$4 sm:$0xff]  }
  0xf0   :  { %1325 = vmatpush1.bf16.msra.mxu1 %v3460_v57  ;;  %1350 = vmatpush1.bf16.msra.mxu0 %v3463_v58  ;;  %v3548_v57 = vld [vmem:[#allocation10 + $0x80] ss:$8 sps:$4 sm:$0xff]   ;;  %v3553_v58 = vld [vmem:[#allocation10 + $0x94] ss:$8 sps:$4 sm:$0xff]  }
  0xf1   :  { %1326 = vmatprep.subr.bf16.mxu1 %v3468_v59  ;;  %1351 = vmatprep.subr.bf16.mxu0 %v3471_v60  ;;  %v3551_v59 = vld [vmem:[#allocation10 + $0x90] ss:$8 sps:$4 sm:$0xff]   ;;  %v3556_v60 = vld [vmem:[#allocation10 + $0xa4] ss:$8 sps:$4 sm:$0xff]  }
  0xf4   :  { %1327 = vmatpush1.bf16.msra.mxu1 %v3466_v61  ;;  %1352 = vmatpush1.bf16.msra.mxu0 %v3469_v62  ;;  %v3554_v61 = vld [vmem:[#allocation10 + $0xa0] ss:$8 sps:$4 sm:$0xff]   ;;  %v3559_v62 = vld [vmem:[#allocation10 + $0xb4] ss:$8 sps:$4 sm:$0xff]  }
  0xf5   :  { %1328 = vmatprep.subr.bf16.mxu1 %v3474_v63  ;;  %1353 = vmatprep.subr.bf16.mxu0 %v3477_v0  ;;  %v3557_v63 = vld [vmem:[#allocation10 + $0xb0] ss:$8 sps:$4 sm:$0xff]   ;;  %v3562_v0 = vld [vmem:[#allocation10 + $0xc4] ss:$8 sps:$4 sm:$0xff]  }
  0xf8   :  { %1329 = vmatpush1.bf16.msra.mxu1 %v3472_v1  ;;  %1354 = vmatpush1.bf16.msra.mxu0 %v3475_v2  ;;  %v3560_v1 = vld [vmem:[#allocation10 + $0xc0] ss:$8 sps:$4 sm:$0xff]   ;;  %v3565_v2 = vld [vmem:[#allocation10 + $0xd4] ss:$8 sps:$4 sm:$0xff]  }
  0xf9   :  { %1330 = vmatprep.subr.bf16.mxu1 %v3480_v3  ;;  %1355 = vmatprep.subr.bf16.mxu0 %v3483_v4  ;;  %v3563_v3 = vld [vmem:[#allocation10 + $0xd0] ss:$8 sps:$4 sm:$0xff]   ;;  %v3568_v4 = vld [vmem:[#allocation10 + $0xe4] ss:$8 sps:$4 sm:$0xff]  }
  0xfc   :  { %1331 = vmatpush1.bf16.msra.mxu1 %v3478_v5  ;;  %1356 = vmatpush1.bf16.msra.mxu0 %v3481_v6  ;;  %v3566_v5 = vld [vmem:[#allocation10 + $0xe0] ss:$8 sps:$4 sm:$0xff]   ;;  %v3571_v6 = vld [vmem:[#allocation10 + $0xf4] ss:$8 sps:$4 sm:$0xff]  }
  0xfd   :  { %1357 = vmatprep.subr.bf16.mxu0 %v3486_v7  ;;  %3224 = vmatprep.subr.bf16.mxu1 %v3487_v8  ;;  %v3569_v7 = vld [vmem:[#allocation10 + $0xf0] ss:$8 sps:$4 sm:$0xff]   ;;  %v3574_v8 = vld [vmem:[#allocation10 + $0x104] ss:$8 sps:$4 sm:$0xff]  }
  0xff   :  { %1333 = vmatmul.mubr.bf16.vlgmr.msra.gmra.mrb[4].mxu1 %v4166_v11 }
 0x100   :  { %1358 = vmatpush1.bf16.msra.mxu0 %v3484_v9  ;;  %3225 = vmatpush3.bf16.msra.mxu1 %v3488_v10 }
 0x101   :  { %1359 = vmatprep.subr.bf16.mxu0 %v3491_v12  ;;  %3226 = vmatprep.subr.bf16.mxu1 %v3492_v13 }
 0x102   :  { %1414 = vmatprep.mubr.bf16.mxu1 %v4159_v40  ;;  %v3526_v40 = vld [vmem:[#allocation10 + $0x4] ss:$8 sps:$4 sm:$0xff]  }
 0x104   :  { %1360 = vmatpush1.bf16.msra.mxu0 %v3489_v14  ;;  %3227 = vmatpush3.bf16.msra.mxu1 %v3493_v15 }
 0x105   :  { %1361 = vmatprep.subr.bf16.mxu0 %v3496_v16  ;;  %3228 = vmatprep.subr.bf16.mxu1 %v3497_v17 }
 0x108   :  { %1362 = vmatpush1.bf16.msra.mxu0 %v3494_v18  ;;  %3229 = vmatpush3.bf16.msra.mxu1 %v3498_v19 }
 0x109   :  { %1363 = vmatprep.subr.bf16.mxu0 %v3501_v20  ;;  %3230 = vmatprep.subr.bf16.mxu1 %v3502_v21 }
 0x10c   :  { %1364 = vmatpush1.bf16.msra.mxu0 %v3499_v22  ;;  %3231 = vmatpush3.bf16.msra.mxu1 %v3503_v23  ;;  %v3997_v22 = vmov 0   ;;  %v3644_v23 = vld [vmem:[#allocation13] ss:$20 sps:$4 sm:$0xff]  }
 0x10d   :  { %1365 = vmatprep.subr.bf16.mxu0 %v3506_v24  ;;  %3232 = vmatprep.subr.bf16.mxu1 %v3507_v25  ;;  %v3646_v24 = vld [vmem:[#allocation13 + $0x4] ss:$20 sps:$4 sm:$0xff]   ;;  %v3649_v25 = vld [vmem:[#allocation13 + $0x2c] ss:$20 sps:$4 sm:$0xff]  }
 0x10e   :  { %3295 = vset.pattern.permute.xlu1 %v3997_v22 }
 0x110   :  { %1366 = vmatpush1.bf16.msra.mxu0 %v3504_v26  ;;  %3233 = vmatpush3.bf16.msra.mxu1 %v3508_v27  ;;  %v3647_v26 = vld [vmem:[#allocation13 + $0x28] ss:$20 sps:$4 sm:$0xff]  }
 0x111   :  { %1367 = vmatprep.subr.bf16.mxu0 %v3511_v28  ;;  %3234 = vmatprep.subr.bf16.mxu1 %v3512_v29  ;;  %v3652_v27 = vld [vmem:[#allocation13 + $0x54] ss:$20 sps:$4 sm:$0xff]   ;;  %v3650_v28 = vld [vmem:[#allocation13 + $0x50] ss:$20 sps:$4 sm:$0xff]   ;;  %v1424_v29 = vlaneseq }
 0x114   :  { %1368 = vmatpush1.bf16.msra.mxu0 %v3509_v30  ;;  %3235 = vmatpush3.bf16.msra.mxu1 %v3513_v31  ;;  %v3655_v30 = vld [vmem:[#allocation13 + $0x7c] ss:$20 sps:$4 sm:$0xff]   ;;  %v3653_v31 = vld [vmem:[#allocation13 + $0x78] ss:$20 sps:$4 sm:$0xff]  }
 0x115   :  { %1369 = vmatprep.subr.bf16.mxu0 %v3516_v32  ;;  %3236 = vmatprep.subr.bf16.mxu1 %v3517_v33  ;;  %v4180_v32 = vshrl.u32 %v1424_v29, 7  ;;  %v3658_v33 = vld [vmem:[#allocation13 + $0xa4] ss:$20 sps:$4 sm:$0xff]  }
 0x118   :  { %1370 = vmatpush1.bf16.msra.mxu0 %v3514_v34  ;;  %3237 = vmatpush3.bf16.msra.mxu1 %v3518_v35  ;;  %v3656_v34 = vld [vmem:[#allocation13 + $0xa0] ss:$20 sps:$4 sm:$0xff]   ;;  %v4183_v35 = vsub.s32 0, %v4180_v32 }
 0x119   :  { %1371 = vmatprep.subr.bf16.mxu0 %v3521_v36  ;;  %3238 = vmatprep.subr.bf16.mxu1 %v3522_v37  ;;  %v3661_v36 = vld [vmem:[#allocation13 + $0xcc] ss:$20 sps:$4 sm:$0xff]   ;;  %v4188_v37 = vld [vmem:[%s4330_s4] sm:$0x1f] }
 0x11c   :  { %1372 = vmatpush1.bf16.msra.mxu0 %v3519_v38  ;;  %3239 = vmatpush3.bf16.msra.mxu1 %v3523_v39  ;;  %v4191_v38 = vsub.s32 1, %v4180_v32  ;;  %v3659_v39 = vld [vmem:[#allocation13 + $0xc8] ss:$20 sps:$4 sm:$0xff]  }
 0x11d   :  { %1956 = vmatprep.subr.bf16.mxu0 %v3526_v40  ;;  %2622 = vmatprep.subr.bf16.mxu1 %v3646_v24  ;;  %v1427_v40 = vrot.slane %v4188_v37, %v4183_v35  ;;  %v3683_v24 = vld [vmem:[#allocation13 + $0x208] ss:$20 sps:$4 sm:$0xff]  }
 0x11f   :  { %1374 = vmatmul.mubr.bf16.vlgmr.msra.gmra.mrb[8].mxu0 %v4166_v11  ;;  %1415 = vmatmul.mubr.bf16.vlgmr.msra.gmra.mrb[8].mxu1 %v4166_v11 }
 0x120   :  { %1957 = vmatpush1.bf16.msra.mxu0 %v3524_v41  ;;  %2623 = vmatpush1.bf16.msra.mxu1 %v3644_v23  ;;  %v3664_v41 = vld [vmem:[#allocation13 + $0xf4] ss:$20 sps:$4 sm:$0xff]   ;;  %v1442_v23 = vsub.s32 4, %v4180_v32 }
 0x121   :  { %1958 = vmatprep.subr.bf16.mxu0 %v3529_v42  ;;  %2624 = vmatprep.subr.bf16.mxu1 %v3649_v25 }
 0x124   :  { %1959 = vmatpush1.bf16.msra.mxu0 %v3527_v43  ;;  %2625 = vmatpush1.bf16.msra.mxu1 %v3647_v26  ;;  %v1431_v43 = vrot.slane %v4188_v37, %v4191_v38 }
 0x125   :  { %1960 = vmatprep.subr.bf16.mxu0 %v3532_v44  ;;  %2626 = vmatprep.subr.bf16.mxu1 %v3652_v27 }
 0x128   :  { %1961 = vmatpush1.bf16.msra.mxu0 %v3530_v45  ;;  %2627 = vmatpush1.bf16.msra.mxu1 %v3650_v28 }
 0x129   :  { %1962 = vmatprep.subr.bf16.mxu0 %v3535_v46  ;;  %2628 = vmatprep.subr.bf16.mxu1 %v3655_v30  ;;  %v3590_v30 = vld [vmem:[#allocation10 + $0x160] ss:$8 sps:$4 sm:$0xff]  }
 0x12c   :  { %1963 = vmatpush1.bf16.msra.mxu0 %v3533_v47  ;;  %2629 = vmatpush1.bf16.msra.mxu1 %v3653_v31 }
 0x12d   :  { %1964 = vmatprep.subr.bf16.mxu0 %v3538_v48  ;;  %2630 = vmatprep.subr.bf16.mxu1 %v3658_v33  ;;  %v3662_v48 = vld [vmem:[#allocation13 + $0xf0] ss:$20 sps:$4 sm:$0xff]  }
 0x130   :  { %1965 = vmatpush1.bf16.msra.mxu0 %v3536_v49  ;;  %2631 = vmatpush1.bf16.msra.mxu1 %v3656_v34 }
 0x131   :  { %1966 = vmatprep.subr.bf16.mxu0 %v3541_v50  ;;  %2632 = vmatprep.subr.bf16.mxu1 %v3661_v36  ;;  %v3595_v36 = vld [vmem:[#allocation10 + $0x174] ss:$8 sps:$4 sm:$0xff]  }
 0x134   :  { %1967 = vmatpush1.bf16.msra.mxu0 %v3539_v51  ;;  %2633 = vmatpush1.bf16.msra.mxu1 %v3659_v39  ;;  %v3667_v51 = vld [vmem:[#allocation13 + $0x11c] ss:$20 sps:$4 sm:$0xff]  }
 0x135   :  { %1968 = vmatprep.subr.bf16.mxu0 %v3544_v52  ;;  %2634 = vmatprep.subr.bf16.mxu1 %v3664_v41  ;;  %v1443_v41 = vrot.slane %v4188_v37, %v1442_v23 }
 0x138   :  { %1969 = vmatpush1.bf16.msra.mxu0 %v3542_v53  ;;  %2635 = vmatpush1.bf16.msra.mxu1 %v3662_v48  ;;  %v3593_v48 = vld [vmem:[#allocation10 + $0x170] ss:$8 sps:$4 sm:$0xff]  }
 0x139   :  { %1970 = vmatprep.subr.bf16.mxu0 %v3547_v54  ;;  %2636 = vmatprep.subr.bf16.mxu1 %v3667_v51 }
 0x13c   :  { %1971 = vmatpush1.bf16.msra.mxu0 %v3545_v55  ;;  %v3665_v55 = vld [vmem:[#allocation13 + $0x118] ss:$20 sps:$4 sm:$0xff]  }
 0x13d   :  { %1972 = vmatprep.subr.bf16.mxu0 %v3550_v56  ;;  %v3670_v56 = vld [vmem:[#allocation13 + $0x144] ss:$20 sps:$4 sm:$0xff]   ;;  %2637 = vmatpush1.bf16.msra.mxu1 %v3665_v55 }
 0x13e   :  { %2638 = vmatprep.subr.bf16.mxu1 %v3670_v56  ;;  %v3602_v55 = vld [vmem:[#allocation10 + $0x1a0] ss:$8 sps:$4 sm:$0xff]   ;;  %v3605_v56 = vld [vmem:[#allocation10 + $0x1b0] ss:$8 sps:$4 sm:$0xff]  }
 0x140   :  { %1973 = vmatpush1.bf16.msra.mxu0 %v3548_v57 }
 0x141   :  { %1974 = vmatprep.subr.bf16.mxu0 %v3553_v58  ;;  %v3572_v58 = vld [vmem:[#allocation10 + $0x100] ss:$8 sps:$4 sm:$0xff]  }
 0x144   :  { %1975 = vmatpush1.bf16.msra.mxu0 %v3551_v59 }
 0x145   :  { %1976 = vmatprep.subr.bf16.mxu0 %v3556_v60  ;;  %v3577_v60 = vld [vmem:[#allocation10 + $0x114] ss:$8 sps:$4 sm:$0xff]  }
 0x148   :  { %1977 = vmatpush1.bf16.msra.mxu0 %v3554_v61  ;;  %v3668_v61 = vld [vmem:[#allocation13 + $0x140] ss:$20 sps:$4 sm:$0xff]  }
 0x149   :  { %1978 = vmatprep.subr.bf16.mxu0 %v3559_v62  ;;  %v3673_v62 = vld [vmem:[#allocation13 + $0x16c] ss:$20 sps:$4 sm:$0xff]   ;;  %2639 = vmatpush1.bf16.msra.mxu1 %v3668_v61 }
 0x14a   :  { %2640 = vmatprep.subr.bf16.mxu1 %v3673_v62  ;;  %v3616_v61 = vld [vmem:[#allocation10 + $0x1e4] ss:$8 sps:$4 sm:$0xff]   ;;  %v3614_v62 = vld [vmem:[#allocation10 + $0x1e0] ss:$8 sps:$4 sm:$0xff]  }
 0x14c   :  { %1979 = vmatpush1.bf16.msra.mxu0 %v3557_v63  ;;  %v3575_v63 = vld [vmem:[#allocation10 + $0x110] ss:$8 sps:$4 sm:$0xff]  }
 0x14d   :  { %1980 = vmatprep.subr.bf16.mxu0 %v3562_v0  ;;  %v3580_v0 = vld [vmem:[#allocation10 + $0x124] ss:$8 sps:$4 sm:$0xff]  }
 0x150   :  { %1981 = vmatpush1.bf16.msra.mxu0 %v3560_v1  ;;  %v3671_v1 = vld [vmem:[#allocation13 + $0x168] ss:$20 sps:$4 sm:$0xff]  }
 0x151   :  { %1982 = vmatprep.subr.bf16.mxu0 %v3565_v2  ;;  %v3676_v2 = vld [vmem:[#allocation13 + $0x194] ss:$20 sps:$4 sm:$0xff]   ;;  %2641 = vmatpush1.bf16.msra.mxu1 %v3671_v1 }
 0x152   :  { %2642 = vmatprep.subr.bf16.mxu1 %v3676_v2  ;;  %v3622_v2 = vld [vmem:[#allocation10 + $0x204] ss:$8 sps:$4 sm:$0xff]  }
 0x154   :  { %1983 = vmatpush1.bf16.msra.mxu0 %v3563_v3  ;;  %v3578_v3 = vld [vmem:[#allocation10 + $0x120] ss:$8 sps:$4 sm:$0xff]  }
 0x155   :  { %1984 = vmatprep.subr.bf16.mxu0 %v3568_v4  ;;  %v3583_v4 = vld [vmem:[#allocation10 + $0x134] ss:$8 sps:$4 sm:$0xff]  }
 0x158   :  { %1985 = vmatpush1.bf16.msra.mxu0 %v3566_v5  ;;  %v3674_v5 = vld [vmem:[#allocation13 + $0x190] ss:$20 sps:$4 sm:$0xff]  }
 0x159   :  { %1986 = vmatprep.subr.bf16.mxu0 %v3571_v6  ;;  %v3679_v6 = vld [vmem:[#allocation13 + $0x1bc] ss:$20 sps:$4 sm:$0xff]   ;;  %2643 = vmatpush1.bf16.msra.mxu1 %v3674_v5 }
 0x15a   :  { %2644 = vmatprep.subr.bf16.mxu1 %v3679_v6  ;;  %v3625_v5 = vld [vmem:[#allocation10 + $0x214] ss:$8 sps:$4 sm:$0xff]   ;;  %v3623_v6 = vld [vmem:[#allocation10 + $0x210] ss:$8 sps:$4 sm:$0xff]  }
 0x15c   :  { %1987 = vmatpush1.bf16.msra.mxu0 %v3569_v7  ;;  %v3581_v7 = vld [vmem:[#allocation10 + $0x130] ss:$8 sps:$4 sm:$0xff]  }
 0x15d   :  { %1997 = vmatprep.subr.bf16.mxu0 %v3574_v8  ;;  %v3586_v8 = vld [vmem:[#allocation10 + $0x144] ss:$8 sps:$4 sm:$0xff]  }
 0x192   :  { %v4172_v9 = vpop.f32.mrb[0].mxu1  ;;  %v796_v10 = vpop.f32.mrb[0].mxu0 }
 0x193   :  { %v4174_v11 = vpop.f32.mrb[1].mxu1  ;;  %v798_v12 = vpop.f32.mrb[1].mxu0 }
 0x194   :  { %v841_v13 = vpop.f32.mrb[2].mxu1  ;;  %v800_v14 = vpop.f32.mrb[2].mxu0 }
 0x195   :  { %v842_v15 = vpop.f32.mrb[3].mxu1  ;;  %v801_v16 = vpop.f32.mrb[3].mxu0  ;;  %v3584_v13 = vld [vmem:[#allocation10 + $0x140] ss:$8 sps:$4 sm:$0xff]   ;;  %v3589_v14 = vld [vmem:[#allocation10 + $0x154] ss:$8 sps:$4 sm:$0xff]  }
 0x196   :  { %v3680_v15 = vld [vmem:[#allocation13 + $0x1e0] ss:$20 sps:$4 sm:$0xff]   ;;  %v1434_v16 = vsub.s32 2, %v4180_v32 }
 0x198   :  { %v1435_v25 = vrot.slane %v4188_v37, %v1434_v16 }
 0x1b2   :  { %v3218_v17 = vpop.f32.mrb[4].mxu0 }
 0x1b3   :  { %v3219_v18 = vpop.f32.mrb[5].mxu0 }
 0x1b4   :  { %v4176_v19 = vadd.f32 %v3219_v18, %v3218_v17  ;;  %v3221_v20 = vpop.f32.mrb[6].mxu0  ;;  %v3685_v17 = vld [vmem:[#allocation13 + $0x20c] ss:$20 sps:$4 sm:$0xff]  }
 0x1b5   :  { %v3222_v21 = vpop.f32.mrb[7].mxu0  ;;  %v3587_v18 = vld [vmem:[#allocation10 + $0x150] ss:$8 sps:$4 sm:$0xff]   ;;  %v1438_v20 = vsub.s32 3, %v4180_v32 }
 0x1b6   :  { %v3592_v21 = vld [vmem:[#allocation10 + $0x164] ss:$8 sps:$4 sm:$0xff]  }
 0x1b7   :  { %v1439_v28 = vrot.slane %v4188_v37, %v1438_v20  ;;  %v3601_v37 = vld [vmem:[#allocation10 + $0x194] ss:$8 sps:$4 sm:$0xff]  }
 0x1d2   :  { %v1334_v42 = vpop.f32.mrb[4].mxu1 }
 0x1d3   :  { %v1335_v44 = vadd.f32 %v1334_v42, %v796_v10  ;;  %v1336_v45 = vpop.f32.mrb[5].mxu1  ;;  %v3677_v10 = vld [vmem:[#allocation13 + $0x1b8] ss:$20 sps:$4 sm:$0xff]  }
 0x1d4   :  { %v1337_v46 = vadd.f32 %v1336_v45, %v798_v12  ;;  %v1338_v47 = vpop.f32.mrb[6].mxu1  ;;  %v3682_v12 = vld [vmem:[#allocation13 + $0x1e4] ss:$20 sps:$4 sm:$0xff]   ;;  %2645 = vmatpush1.bf16.msra.mxu1 %v3677_v10 }
 0x1d5   :  { %v1449_v49 = vadd.f32 %v1427_v40, %v1335_v44  ;;  %v1339_v50 = vpop.f32.mrb[7].mxu1  ;;  %2646 = vmatprep.subr.bf16.mxu1 %v3682_v12  ;;  %v3631_v10 = vld [vmem:[#allocation10 + $0x234] ss:$8 sps:$4 sm:$0xff]   ;;  %v3629_v12 = vld [vmem:[#allocation10 + $0x230] ss:$8 sps:$4 sm:$0xff]  }
 0x1d6   :  { %v1450_v52 = vadd.f32 %v1431_v43, %v1337_v46 }
 0x1d7   :  { %v1454_v53 = vmax.f32 %v1449_v49, 0.0  ;;  %v3598_v49 = vld [vmem:[#allocation10 + $0x184] ss:$8 sps:$4 sm:$0xff]  }
 0x1d8   :  { %v1455_v54 = vmax.f32 %v1450_v52, 0.0  ;;  %2647 = vmatpush1.bf16.msra.mxu1 %v3680_v15  ;;  %v3596_v52 = vld [vmem:[#allocation10 + $0x180] ss:$8 sps:$4 sm:$0xff]   ;;  %v3637_v15 = vld [vmem:[#allocation10 + $0x254] ss:$8 sps:$4 sm:$0xff]  }
 0x1d9   :  { %v1459_v59 = vpack.c.bf16 %v1454_v53, %v1454_v53  ;;  %2648 = vmatprep.subr.bf16.mxu1 %v3685_v17  ;;  %v3599_v53 = vld [vmem:[#allocation10 + $0x190] ss:$8 sps:$4 sm:$0xff]  }
 0x1da   :  { %v1460_v57 = vpack.c.bf16 %v1455_v54, %v1455_v54  ;;  %v3604_v54 = vld [vmem:[#allocation10 + $0x1a4] ss:$8 sps:$4 sm:$0xff]   ;;  %v3635_v17 = vld [vmem:[#allocation10 + $0x250] ss:$8 sps:$4 sm:$0xff]  }
 0x1dc   :  { %1988 = vmatprep.mubr.bf16.mxu0 %v1460_v57  ;;  %2649 = vmatpush1.bf16.msra.mxu1 %v3683_v24  ;;  %v3610_v57 = vld [vmem:[#allocation10 + $0x1c4] ss:$8 sps:$4 sm:$0xff]   ;;  %v3641_v24 = vld [vmem:[#allocation10 + $0x270] ss:$8 sps:$4 sm:$0xff]  }
 0x1dd   :  { %1989 = vmatmul.mubr.bf16.vlgmr.msra.gmra.mrb[12].mxu0 %v1459_v59  ;;  %v3613_v59 = vld [vmem:[#allocation10 + $0x1d4] ss:$8 sps:$4 sm:$0xff]  }
 0x1de   :  { %1998 = vmatpush1.bf16.msra.mxu0 %v3572_v58  ;;  %v3608_v58 = vld [vmem:[#allocation10 + $0x1c0] ss:$8 sps:$4 sm:$0xff]  }
 0x1df   :  { %1999 = vmatprep.subr.bf16.mxu0 %v3577_v60  ;;  %v3611_v60 = vld [vmem:[#allocation10 + $0x1d0] ss:$8 sps:$4 sm:$0xff]  }
 0x1e2   :  { %2000 = vmatpush1.bf16.msra.mxu0 %v3575_v63  ;;  %v3619_v63 = vld [vmem:[#allocation10 + $0x1f4] ss:$8 sps:$4 sm:$0xff]  }
 0x1e3   :  { %2001 = vmatprep.subr.bf16.mxu0 %v3580_v0  ;;  %v3617_v0 = vld [vmem:[#allocation10 + $0x1f0] ss:$8 sps:$4 sm:$0xff]  }
 0x1e6   :  { %2002 = vmatpush1.bf16.msra.mxu0 %v3578_v3  ;;  %v3620_v3 = vld [vmem:[#allocation10 + $0x200] ss:$8 sps:$4 sm:$0xff]  }
 0x1e7   :  { %2003 = vmatprep.subr.bf16.mxu0 %v3583_v4 }
 0x1ea   :  { %2004 = vmatpush1.bf16.msra.mxu0 %v3581_v7  ;;  %v3628_v7 = vld [vmem:[#allocation10 + $0x224] ss:$8 sps:$4 sm:$0xff]  }
 0x1eb   :  { %2005 = vmatprep.subr.bf16.mxu0 %v3586_v8  ;;  %v3626_v8 = vld [vmem:[#allocation10 + $0x220] ss:$8 sps:$4 sm:$0xff]  }
 0x1ee   :  { %2006 = vmatpush1.bf16.msra.mxu0 %v3584_v13  ;;  %v3634_v13 = vld [vmem:[#allocation10 + $0x244] ss:$8 sps:$4 sm:$0xff]  }
 0x1ef   :  { %2007 = vmatprep.subr.bf16.mxu0 %v3589_v14  ;;  %v3632_v14 = vld [vmem:[#allocation10 + $0x240] ss:$8 sps:$4 sm:$0xff]  }
 0x1f2   :  { %2008 = vmatpush1.bf16.msra.mxu0 %v3587_v18  ;;  %v1375_v26 = vpop.f32.mrb[8].mxu0  ;;  %v3240_v27 = vpop.f32.mrb[8].mxu1  ;;  %v3640_v18 = vld [vmem:[#allocation10 + $0x264] ss:$8 sps:$4 sm:$0xff]  }
 0x1f3   :  { %v1376_v31 = vadd.f32 %v1375_v26, %v4172_v9  ;;  %v1377_v33 = vpop.f32.mrb[9].mxu0  ;;  %v3241_v34 = vpop.f32.mrb[9].mxu1  ;;  %2009 = vmatprep.subr.bf16.mxu0 %v3592_v21  ;;  %v3643_v21 = vld [vmem:[#allocation10 + $0x274] ss:$8 sps:$4 sm:$0xff]  }
 0x1f4   :  { %v1378_v39 = vadd.f32 %v1377_v33, %v4174_v11  ;;  %v3242_v40 = vadd.f32 %v3241_v34, %v3240_v27  ;;  %v1379_v42 = vpop.f32.mrb[10].mxu0  ;;  %v3243_v43 = vpop.f32.mrb[10].mxu1  ;;  %v3688_v27 = vld [vmem:[#allocation13 + $0x234] ss:$20 sps:$4 sm:$0xff]   ;;  %v3694_v33 = vld [vmem:[#allocation13 + $0xc] ss:$20 sps:$4 sm:$0xff]  }
 0x1f5   :  { %v1451_v44 = vadd.f32 %v1435_v25, %v1376_v31  ;;  %v1380_v45 = vpop.f32.mrb[11].mxu0  ;;  %v3244_v46 = vpop.f32.mrb[11].mxu1  ;;  %2650 = vmatprep.subr.bf16.mxu1 %v3688_v27  ;;  %v3689_v31 = vld [vmem:[#allocation13 + $0x258] ss:$20 sps:$4 sm:$0xff]   ;;  %v1544_v34 = vld [vmem:[#allocation11] sm:$0x3] }
 0x1f6   :  { %v1452_v47 = vadd.f32 %v1439_v28, %v1378_v39  ;;  %v1417_v9 = vadd.f32 %v3242_v40, %v4176_v19  ;;  %2010 = vmatpush1.bf16.msra.mxu0 %v3590_v30  ;;  %v3607_v19 = vld [vmem:[#allocation10 + $0x1b4] ss:$8 sps:$4 sm:$0xff]   ;;  %v1553_v39 = vrot.slane %v1544_v34, %v4191_v38 }
 0x1f7   :  { %2011 = vmatprep.subr.bf16.mxu0 %v3595_v36  ;;  %v1456_v1 = vmax.f32 %v1451_v44, 0.0  ;;  %v3686_v28 = vld [vmem:[#allocation13 + $0x230] ss:$20 sps:$4 sm:$0xff]   ;;  %v1549_v36 = vrot.slane %v1544_v34, %v4183_v35  ;;  %v3753_v34 = vld [vmem:[#allocation13 + $0x100] ss:$20 sps:$4 sm:$0xff]  }
 0x1f8   :  { %v1457_v50 = vmax.f32 %v1452_v47, 0.0  ;;  %v4212_v11 = vadd.f32 %v1443_v41, %v1417_v9  ;;  %2651 = vmatpush1.bf16.msra.mxu1 %v3686_v28  ;;  %v3691_v30 = vld [vmem:[#allocation13 + $0x25c] ss:$20 sps:$4 sm:$0xff]  }
 0x1f9   :  { %v1461_v4 = vpack.c.bf16 %v1456_v1, %v1456_v1  ;;  %2652 = vmatprep.subr.bf16.mxu1 %v3691_v30  ;;  %v3724_v1 = vld [vmem:[#allocation13 + $0x19c] ss:$20 sps:$4 sm:$0xff]   ;;  %v3750_v30 = vld [vmem:[#allocation13 + $0x218] ss:$20 sps:$4 sm:$0xff]  }
 0x1fa   :  { %v1462_v51 = vpack.c.bf16 %v1457_v50, %v1457_v50  ;;  %2012 = vmatpush1.bf16.msra.mxu0 %v3593_v48  ;;  %v1458_v25 = vmax.f32 %v4212_v11, 0.0  ;;  %v3692_v48 = vld [vmem:[#allocation13 + $0x8] ss:$20 sps:$4 sm:$0xff]   ;;  %v3695_v11 = vld [vmem:[#allocation13 + $0x30] ss:$20 sps:$4 sm:$0xff]  }
 0x1fb   :  { %2013 = vmatprep.subr.bf16.mxu0 %v3598_v49  ;;  %v3697_v50 = vld [vmem:[#allocation13 + $0x34] ss:$20 sps:$4 sm:$0xff]   ;;  %v3748_v27 = vld [vmem:[#allocation13 + $0x1f0] ss:$20 sps:$4 sm:$0xff]  }
 0x1fc   :  { %2029 = vmatprep.mubr.bf16.mxu0 %v1462_v51  ;;  %v1463_v26 = vpack.c.bf16 %v1458_v25, %v1458_v25  ;;  %2653 = vmatpush1.bf16.msra.mxu1 %v3689_v31  ;;  %v3700_v51 = vld [vmem:[#allocation13 + $0x5c] ss:$20 sps:$4 sm:$0xff]   ;;  %v3751_v31 = vld [vmem:[#allocation13 + $0xd8] ss:$20 sps:$4 sm:$0xff]  }
 0x1fd   :  { %2663 = vmatprep.subr.bf16.mxu1 %v3694_v33  ;;  %v3746_v25 = vld [vmem:[#allocation13 + $0x1c8] ss:$20 sps:$4 sm:$0xff]   ;;  %v3749_v28 = vld [vmem:[#allocation13 + $0xb0] ss:$20 sps:$4 sm:$0xff]   ;;  %v3752_v33 = vld [vmem:[#allocation13 + $0x240] ss:$20 sps:$4 sm:$0xff]  }
 0x1fe   :  { %2014 = vmatpush1.bf16.msra.mxu0 %v3596_v52  ;;  %v3698_v52 = vld [vmem:[#allocation13 + $0x58] ss:$20 sps:$4 sm:$0xff]  }
 0x1ff   :  { %2015 = vmatprep.subr.bf16.mxu0 %v3601_v37  ;;  %v3703_v37 = vld [vmem:[#allocation13 + $0x84] ss:$20 sps:$4 sm:$0xff]  }
 0x202   :  { %2016 = vmatpush1.bf16.msra.mxu0 %v3599_v53  ;;  %v3701_v53 = vld [vmem:[#allocation13 + $0x80] ss:$20 sps:$4 sm:$0xff]  }
 0x203   :  { %2017 = vmatprep.subr.bf16.mxu0 %v3604_v54  ;;  %v3706_v54 = vld [vmem:[#allocation13 + $0xac] ss:$20 sps:$4 sm:$0xff]  }
 0x206   :  { %2018 = vmatpush1.bf16.msra.mxu0 %v3602_v55  ;;  %v3704_v55 = vld [vmem:[#allocation13 + $0xa8] ss:$20 sps:$4 sm:$0xff]  }
 0x207   :  { %2019 = vmatprep.subr.bf16.mxu0 %v3607_v19  ;;  %v3709_v19 = vld [vmem:[#allocation13 + $0xd4] ss:$20 sps:$4 sm:$0xff]  }
 0x20a   :  { %2020 = vmatpush1.bf16.msra.mxu0 %v3605_v56  ;;  %v3707_v56 = vld [vmem:[#allocation13 + $0xd0] ss:$20 sps:$4 sm:$0xff]  }
 0x20b   :  { %2021 = vmatprep.subr.bf16.mxu0 %v3610_v57  ;;  %v3712_v57 = vld [vmem:[#allocation13 + $0xfc] ss:$20 sps:$4 sm:$0xff]  }
 0x20e   :  { %2022 = vmatpush1.bf16.msra.mxu0 %v3608_v58  ;;  %v3710_v58 = vld [vmem:[#allocation13 + $0xf8] ss:$20 sps:$4 sm:$0xff]  }
 0x20f   :  { %2023 = vmatprep.subr.bf16.mxu0 %v3613_v59  ;;  %v3715_v59 = vld [vmem:[#allocation13 + $0x124] ss:$20 sps:$4 sm:$0xff]  }
 0x212   :  { %2024 = vmatpush1.bf16.msra.mxu0 %v3611_v60  ;;  %v3713_v60 = vld [vmem:[#allocation13 + $0x120] ss:$20 sps:$4 sm:$0xff]  }
 0x213   :  { %2025 = vmatprep.subr.bf16.mxu0 %v3616_v61  ;;  %v3718_v61 = vld [vmem:[#allocation13 + $0x14c] ss:$20 sps:$4 sm:$0xff]  }
 0x216   :  { %2026 = vmatpush1.bf16.msra.mxu0 %v3614_v62  ;;  %v3716_v62 = vld [vmem:[#allocation13 + $0x148] ss:$20 sps:$4 sm:$0xff]  }
 0x217   :  { %2027 = vmatprep.subr.bf16.mxu0 %v3619_v63  ;;  %v3721_v63 = vld [vmem:[#allocation13 + $0x174] ss:$20 sps:$4 sm:$0xff]  }
 0x21a   :  { %2028 = vmatpush1.bf16.msra.mxu0 %v3617_v0  ;;  %v3719_v0 = vld [vmem:[#allocation13 + $0x170] ss:$20 sps:$4 sm:$0xff]  }
 0x21b   :  { %2038 = vmatprep.subr.bf16.mxu0 %v3622_v2  ;;  %v3722_v2 = vld [vmem:[#allocation13 + $0x198] ss:$20 sps:$4 sm:$0xff]  }
 0x21d   :  { %2030 = vmatmul.mubr.bf16.vlgmr.msra.gmra.mrb[12].mxu0 %v1461_v4  ;;  %v3725_v4 = vld [vmem:[#allocation13 + $0x1c0] ss:$20 sps:$4 sm:$0xff]  }
 0x21e   :  { %2039 = vmatpush1.bf16.msra.mxu0 %v3620_v3  ;;  %2070 = vmatprep.mubr.bf16.mxu0 %v3997_v22  ;;  %v3638_v22 = vld [vmem:[#allocation10 + $0x260] ss:$8 sps:$4 sm:$0xff]  }
 0x21f   :  { %2040 = vmatprep.subr.bf16.mxu0 %v3625_v5  ;;  %v3727_v3 = vld [vmem:[#allocation13 + $0x1c4] ss:$20 sps:$4 sm:$0xff]   ;;  %v3730_v5 = vld [vmem:[#allocation13 + $0x1ec] ss:$20 sps:$4 sm:$0xff]  }
 0x222   :  { %2041 = vmatpush1.bf16.msra.mxu0 %v3623_v6  ;;  %v3728_v6 = vld [vmem:[#allocation13 + $0x1e8] ss:$20 sps:$4 sm:$0xff]  }
 0x223   :  { %2042 = vmatprep.subr.bf16.mxu0 %v3628_v7  ;;  %v3733_v7 = vld [vmem:[#allocation13 + $0x214] ss:$20 sps:$4 sm:$0xff]  }
 0x226   :  { %2043 = vmatpush1.bf16.msra.mxu0 %v3626_v8  ;;  %v3731_v8 = vld [vmem:[#allocation13 + $0x210] ss:$20 sps:$4 sm:$0xff]  }
 0x227   :  { %2044 = vmatprep.subr.bf16.mxu0 %v3631_v10  ;;  %v3736_v10 = vld [vmem:[#allocation13 + $0x23c] ss:$20 sps:$4 sm:$0xff]  }
 0x22a   :  { %2045 = vmatpush1.bf16.msra.mxu0 %v3629_v12  ;;  %v3734_v12 = vld [vmem:[#allocation13 + $0x238] ss:$20 sps:$4 sm:$0xff]  }
 0x22b   :  { %2046 = vmatprep.subr.bf16.mxu0 %v3634_v13  ;;  %v3739_v13 = vld [vmem:[#allocation13 + $0x264] ss:$20 sps:$4 sm:$0xff]  }
 0x22e   :  { %2047 = vmatpush1.bf16.msra.mxu0 %v3632_v14  ;;  %v3737_v14 = vld [vmem:[#allocation13 + $0x260] ss:$20 sps:$4 sm:$0xff]  }
 0x22f   :  { %2048 = vmatprep.subr.bf16.mxu0 %v3637_v15  ;;  %v3740_v15 = vld [vmem:[#allocation13 + $0x150] ss:$20 sps:$4 sm:$0xff]  }
 0x232   :  { %2049 = vmatpush1.bf16.msra.mxu0 %v3635_v17  ;;  %v3741_v17 = vld [vmem:[#allocation13 + $0x10] ss:$20 sps:$4 sm:$0xff]  }
 0x233   :  { %2050 = vmatprep.subr.bf16.mxu0 %v3640_v18  ;;  %v3742_v18 = vld [vmem:[#allocation13 + $0x178] ss:$20 sps:$4 sm:$0xff]  }
 0x236   :  { %2051 = vmatpush1.bf16.msra.mxu0 %v3638_v22  ;;  %v3743_v22 = vld [vmem:[#allocation13 + $0x38] ss:$20 sps:$4 sm:$0xff]  }
 0x237   :  { %2052 = vmatprep.subr.bf16.mxu0 %v3643_v21  ;;  %v3744_v21 = vld [vmem:[#allocation13 + $0x1a0] ss:$20 sps:$4 sm:$0xff]  }
 0x23a   :  { %2053 = vmatpush1.bf16.msra.mxu0 %v3641_v24  ;;  %v3745_v24 = vld [vmem:[#allocation13 + $0x60] ss:$20 sps:$4 sm:$0xff]  }
 0x23d   :  { %2071 = vmatmul.mubr.bf16.vlgmr.msra.gmra.mrb[12].mxu0 %v1463_v26  ;;  %v3747_v26 = vld [vmem:[#allocation13 + $0x88] ss:$20 sps:$4 sm:$0xff]  }
 0x310   :  { %v2072_v40 = vpop.f32.mrb[12].mxu0 }
 0x311   :  { %v3268_v41 = vadd.f32 %v2072_v40, %v1549_v36  ;;  %v2074_v42 = vpop.f32.mrb[13].mxu0  ;;  %v3754_v36 = vld [vmem:[#allocation13 + $0x268] ss:$20 sps:$4 sm:$0xff]  }
 0x312   :  { %v3269_v43 = vadd.f32 %v2074_v42, %v1553_v39  ;;  %v2076_v44 = vpop.f32.mrb[14].mxu0  ;;  %v3755_v39 = vld [vmem:[#allocation13 + $0x128] ss:$20 sps:$4 sm:$0xff]  }
 0x313   :  { %v2079_v45 = vmax.f32 %v3268_v41, 0.0  ;;  %v2077_v46 = vpop.f32.mrb[15].mxu0  ;;  %v2179_v40 = vld [vmem:[%s4334_s8] sm:$0x1f]  ;;  %v4232_v41 = vand.u32 127, %v1424_v29  ;;  %s4001_s8 = smov [#allocation15]  }
 0x314   :  { %v2080_v47 = vmax.f32 %v3269_v43, 0.0  ;;  %v2184_v42 = vrot.slane %v2179_v40, %v4183_v35  ;;  %v2188_v43 = vrot.slane %v2179_v40, %v4191_v38  ;;  %v2192_v38 = vrot.slane %v2179_v40, %v1434_v16  ;;  %s2864_s16 = sshll.u32 %s4001_s8, 4  ;;  %s2865_s16 = int_to_ptr.vmem [resolvable:$true] %s2864_s16 }
 0x315   :  { %v4220_v49 = vpack.c.bf16 %v2079_v45, %v2079_v45  ;;  %vm2746_vm0 = vcmp.lt.s32.totalorder %v4232_v41, 4  ;;  %vm2761_vm2 = vcmp.lt.s32.totalorder %v4232_v41, 16  ;;  %s3930_s1 = scalar_lea.vmem %s2865_s16, 32  ;;  %p3935_p1 = scmp.lt.s32.totalorder %s2865_s16, %s2865_s16 }
 0x316   :  { %v4218_v9 = vpack.c.bf16 %v2080_v47, %v2080_v47  ;;  %p3931_p0 = scmp.ne.s32.totalorder %s2865_s16, %s3930_s1  ;;  %p3936_p2 = scmp.lt.s32.totalorder %s3930_s1, %s3930_s1 }
 0x318   :  { %2654 = vmatprep.mubr.bf16.mxu1 %v4218_v9  ;;  %p3937_p3 = por %p3936_p2, %p3935_p1 }
 0x319   :  { %2655 = vmatmul.mubr.bf16.vlgmr.msra.gmra.mrb[12].mxu1 %v4220_v49 }
 0x31a   :  { %2664 = vmatpush1.bf16.msra.mxu1 %v3692_v48  ;;  %2695 = vmatprep.mubr.bf16.mxu1 %v4218_v9  ;;  %p3938_p4 = pnand %p3937_p3, %p3931_p0 }
 0x31b   :  { %2665 = vmatprep.subr.bf16.mxu1 %v3697_v50 }
 0x31e   :  { %2666 = vmatpush1.bf16.msra.mxu1 %v3695_v11  ;;  %v2196_v11 = vrot.slane %v2179_v40, %v1438_v20 }
 0x31f   :  { %2667 = vmatprep.subr.bf16.mxu1 %v3700_v51 }
 0x322   :  { %2668 = vmatpush1.bf16.msra.mxu1 %v3698_v52 }
 0x323   :  { %2669 = vmatprep.subr.bf16.mxu1 %v3703_v37 }
 0x326   :  { %2670 = vmatpush1.bf16.msra.mxu1 %v3701_v53 }
 0x327   :  { %2671 = vmatprep.subr.bf16.mxu1 %v3706_v54 }
 0x32a   :  { %2672 = vmatpush1.bf16.msra.mxu1 %v3704_v55 }
 0x32b   :  { %2673 = vmatprep.subr.bf16.mxu1 %v3709_v19 }
 0x32e   :  { %2674 = vmatpush1.bf16.msra.mxu1 %v3707_v56 }
 0x32f   :  { %2675 = vmatprep.subr.bf16.mxu1 %v3712_v57 }
 0x332   :  { %2676 = vmatpush1.bf16.msra.mxu1 %v3710_v58  ;;  %v2200_v58 = vrot.slane %v2179_v40, %v1442_v23 }
 0x333   :  { %2677 = vmatprep.subr.bf16.mxu1 %v3715_v59 }
 0x336   :  { %2678 = vmatpush1.bf16.msra.mxu1 %v3713_v60 }
 0x337   :  { %2679 = vmatprep.subr.bf16.mxu1 %v3718_v61 }
 0x33a   :  { %2680 = vmatpush1.bf16.msra.mxu1 %v3716_v62 }
 0x33b   :  { %2681 = vmatprep.subr.bf16.mxu1 %v3721_v63 }
 0x33e   :  { %2682 = vmatpush1.bf16.msra.mxu1 %v3719_v0 }
 0x33f   :  { %2683 = vmatprep.subr.bf16.mxu1 %v3724_v1 }
 0x342   :  { %2684 = vmatpush1.bf16.msra.mxu1 %v3722_v2 }
 0x343   :  { %2685 = vmatprep.subr.bf16.mxu1 %v3727_v3 }
 0x346   :  { %2686 = vmatpush1.bf16.msra.mxu1 %v3725_v4 }
 0x347   :  { %2687 = vmatprep.subr.bf16.mxu1 %v3730_v5 }
 0x34a   :  { %2688 = vmatpush1.bf16.msra.mxu1 %v3728_v6 }
 0x34b   :  { %2689 = vmatprep.subr.bf16.mxu1 %v3733_v7 }
 0x34e   :  { %2690 = vmatpush1.bf16.msra.mxu1 %v3731_v8 }
 0x34f   :  { %2691 = vmatprep.subr.bf16.mxu1 %v3736_v10 }
 0x352   :  { %2692 = vmatpush1.bf16.msra.mxu1 %v3734_v12  ;;  %v3998_v12 = vmov 1  }
 0x353   :  { %2693 = vmatprep.subr.bf16.mxu1 %v3739_v13  ;;  %3296 = vset.pattern.permute.xlu0 %v3998_v12 }
 0x356   :  { %2694 = vmatpush1.bf16.msra.mxu1 %v3737_v14 }
 0x357   :  { %3246 = vmatprep.subr.bf16.mxu1 %v3740_v15 }
 0x359   :  { %2696 = vmatmul.mubr.bf16.vlgmr.msra.gmra.mrb[16].mxu1 %v4220_v49 }
 0x35a   :  { %3247 = vmatpush3.bf16.msra.mxu1 %v3741_v17  ;;  %2736 = vmatprep.mubr.bf16.mxu1 %v4218_v9 }
 0x35b   :  { %3248 = vmatprep.subr.bf16.mxu1 %v3742_v18 }
 0x35e   :  { %3249 = vmatpush3.bf16.msra.mxu1 %v3743_v22 }
 0x35f   :  { %3250 = vmatprep.subr.bf16.mxu1 %v3744_v21 }
 0x362   :  { %3251 = vmatpush3.bf16.msra.mxu1 %v3745_v24 }
 0x363   :  { %3252 = vmatprep.subr.bf16.mxu1 %v3746_v25 }
 0x366   :  { %3253 = vmatpush3.bf16.msra.mxu1 %v3747_v26 }
 0x367   :  { %3254 = vmatprep.subr.bf16.mxu1 %v3748_v27 }
 0x36a   :  { %3255 = vmatpush3.bf16.msra.mxu1 %v3749_v28 }
 0x36b   :  { %3256 = vmatprep.subr.bf16.mxu1 %v3750_v30 }
 0x36e   :  { %3257 = vmatpush3.bf16.msra.mxu1 %v3751_v31  ;;  %v3999_v31 = vmov 2  }
 0x36f   :  { %3258 = vmatprep.subr.bf16.mxu1 %v3752_v33  ;;  %v4000_v33 = vmov 3  }
 0x372   :  { %3259 = vmatpush3.bf16.msra.mxu1 %v3753_v34 }
 0x373   :  { %3260 = vmatprep.subr.bf16.mxu1 %v3754_v36 }
 0x376   :  { %3261 = vmatpush3.bf16.msra.mxu1 %v3755_v39 }
 0x379   :  { %2737 = vmatmul.mubr.bf16.vlgmr.msra.gmra.mrb[20].mxu1 %v4220_v49 }
 0x3ec   :  { %v2656_v44 = vpop.f32.mrb[12].mxu1 }
 0x3ed   :  { %v2657_v45 = vadd.f32 %v2656_v44, %v2184_v42  ;;  %v2658_v46 = vpop.f32.mrb[13].mxu1 }
 0x3ee   :  { %v2659_v47 = vadd.f32 %v2658_v46, %v2188_v43  ;;  %v2660_v9 = vpop.f32.mrb[14].mxu1 }
 0x3ef   :  { %v2661_v48 = vpop.f32.mrb[15].mxu1  ;;  %v2747_v49 = vsel %vm2746_vm0, %v2657_v45, -1e+30 }
 0x3f0   :  { %v2749_v50 = vsel %vm2748_vm1, %v2747_v49, -inf  ;;  %v4241_v29 = vsel %vm2761_vm2, %v2659_v47, -1e+30 }
 0x3f1   :  { %2750 = vmax.xlane.f32.xlu0 %v2749_v50  ;;  %v2763_v35 = vsel %vm2748_vm1, %v4241_v29, -inf }
 0x3f5   :  { %2764 = vmax.xlane.f32.xlu0 %v2763_v35 }
 0x42c   :  { %v2697_v51 = vpop.f32.mrb[16].mxu1 }
 0x42d   :  { %v2698_v52 = vadd.f32 %v2697_v51, %v2192_v38  ;;  %v2699_v37 = vpop.f32.mrb[17].mxu1 }
 0x42e   :  { %v2700_v53 = vadd.f32 %v2699_v37, %v2196_v11  ;;  %v2701_v54 = vpop.f32.mrb[18].mxu1 }
 0x42f   :  { %v2702_v55 = vpop.f32.mrb[19].mxu1  ;;  %v4251_v19 = vsel %vm2761_vm2, %v2698_v52, -1e+30 }
 0x430   :  { %v2785_v56 = vsel %vm2748_vm1, %v4251_v19, -inf  ;;  %v4257_v57 = vsel %vm2761_vm2, %v2700_v53, -1e+30 }
 0x431   :  { %2786 = vmax.xlane.f32.xlu1 %v2785_v56  ;;  %v2806_v16 = vsel %vm2748_vm1, %v4257_v57, -inf }
 0x435   :  { %2807 = vmax.xlane.f32.xlu1 %v2806_v16 }
 0x44c   :  { %v3262_v20 = vpop.f32.mrb[20].mxu1 }
 0x44d   :  { %v3263_v59 = vpop.f32.mrb[21].mxu1 }
 0x44e   :  { %v3264_v60 = vadd.f32 %v3263_v59, %v3262_v20  ;;  %v3265_v61 = vpop.f32.mrb[22].mxu1 }
 0x44f   :  { %v3266_v62 = vpop.f32.mrb[23].mxu1 }
 0x450   :  { %v2739_v63 = vadd.f32 %v3264_v60, %v2200_v58 }
 0x452   :  { %v4265_v0 = vsel %vm2761_vm2, %v2739_v63, -1e+30 }
 0x453   :  { %v2827_v1 = vsel %vm2748_vm1, %v4265_v0, -inf }
 0x454   :  { %2828 = vmax.xlane.f32.xlu0 %v2827_v1 }
 0x47e   :  { %v2751_v2 = vpop.xlane.xlu0 %2750 }
 0x47f   :  { %v2752_v3 = vsub.f32 %v2747_v49, %v2751_v2 }
 0x481   :  { %v2753_v4 = vmul.f32 1.442695, %v2752_v3 }
 0x482   :  { %v4269_v5 = vpop.xlane.xlu0 %2764 }
 0x483   :  { %3756 = vpow2.f32 %v2753_v4  ;;  %v2766_v32 = vsub.f32 %v4241_v29, %v4269_v5 }
 0x485   :  { %v2767_v23 = vmul.f32 1.442695, %v2766_v32 }
 0x487   :  { %3758 = vpow2.f32 %v2767_v23 }
 0x48d   :  { %v3757_v6 = vpop.eup %3756 }
 0x48e   :  { %v2755_v7 = vsel %vm2748_vm1, %v3757_v6, 0.0 }
 0x48f   :  { %2756 = vadd.xlane.f32.xlu1 %v2755_v7 }
 0x491   :  { %v3759_v8 = vpop.eup %3758 }
 0x492   :  { %v2769_v10 = vsel %vm2748_vm1, %v3759_v8, 0.0 }
 0x493   :  { %2770 = vadd.xlane.f32.xlu0 %v2769_v10 }
 0x4be   :  { %v4275_v13 = vpop.xlane.xlu1 %2786 }
 0x4bf   :  { %v2788_v14 = vsub.f32 %v4251_v19, %v4275_v13 }
 0x4c1   :  { %v2789_v15 = vmul.f32 1.442695, %v2788_v14 }
 0x4c2   :  { %v4279_v17 = vpop.xlane.xlu1 %2807 }
 0x4c3   :  { %3760 = vpow2.f32 %v2789_v15  ;;  %v2809_v18 = vsub.f32 %v4257_v57, %v4279_v17 }
 0x4c5   :  { %v2810_v22 = vmul.f32 1.442695, %v2809_v18 }
 0x4c7   :  { %3762 = vpow2.f32 %v2810_v22 }
 0x4cd   :  { %v3761_v21 = vpop.eup %3760 }
 0x4ce   :  { %v2791_v24 = vsel %vm2748_vm1, %v3761_v21, 0.0 }
 0x4cf   :  { %2792 = vadd.xlane.f32.xlu0 %v2791_v24 }
 0x4d1   :  { %v3763_v25 = vpop.eup %3762 }
 0x4d2   :  { %v2812_v26 = vsel %vm2748_vm1, %v3763_v25, 0.0 }
 0x4d3   :  { %2813 = vadd.xlane.f32.xlu1 %v2812_v26 }
 0x4e1   :  { %v2829_v34 = vpop.xlane.xlu0 %2828 }
 0x4e2   :  { %v2830_v36 = vsub.f32 %v4265_v0, %v2829_v34 }
 0x4e4   :  { %v2831_v39 = vmul.f32 1.442695, %v2830_v36 }
 0x51c   :  { %v2757_v27 = vpop.xlane.xlu1 %2756 }
 0x51d   :  { %3764 = vrcp.f32 %v2757_v27 }
 0x51e   :  { %3766 = vpow2.f32 %v2831_v39 }
 0x527   :  { %v3765_v28 = vpop.eup %3764 }
 0x528   :  { %v2759_v30 = vmul.f32 %v3765_v28, %v3757_v6  ;;  %v3767_v40 = vpop.eup %3766 }
 0x529   :  { %v2833_v42 = vsel %vm2748_vm1, %v3767_v40, 0.0 }
 0x52a   :  { %2760 = vst [vmem:[#allocation15] sm:$0x3] %v2759_v30  ;;  %2779 = vperm.xlu1 %3295, %v2759_v30   ;;  %2800 = vperm.xlu0 %3296, %v2759_v30  }
 0x52e   :  { %3297 = vset.pattern.permute.xlu1 %v3999_v31  ;;  %3299 = vset.pattern.permute.xlu0 %v4000_v33 }
 0x52f   :  { %2821 = vperm.xlu1 %3297, %v2759_v30  }
 0x533   :  { %3298 = vset.pattern.permute.xlu1 %v4000_v33 }
 0x534   :  { %2842 = vperm.xlu1 %3298, %v2759_v30  }
 0x549   :  { %2834 = vadd.xlane.f32.xlu0 %v2833_v42 }
 0x54a   :  { %3941 = shalt.err (!%p3938_p4)
}
 0x54b   :  { %s3942_s20 = scalar_lea.hbm %s4336_s10, 32 }
 0x54c   :  { %p3943_p5 = scmp.ne.s32.totalorder %s4336_s10, %s3942_s20  ;;  %p3946_p6 = scmp.lt.u32.totalorder %s3942_s20, %s4336_s10 }
 0x54e   :  { %p3948_p7 = pnand %p3946_p6, %p3943_p5 }
 0x550   :  { %3951 = shalt.err (!%p3948_p7)
}
 0x551   :  { %2867 = dma.vmem_to_hbm [thread:$0]  %s2865_s16, 32, %s4336_s10, [#allocation16]   ;;  %v2771_v43 = vpop.xlane.xlu0 %2770 }
 0x552   :  { %3768 = vlog2.f32 %v2771_v43  ;;  %s4002_s10 = smov [#allocation14]  }
 0x553   :  { %s2854_s23 = sshll.u32 %s4002_s10, 4  ;;  %s2855_s23 = int_to_ptr.vmem [resolvable:$true] %s2854_s23 }
 0x554   :  { %s3952_s24 = scalar_lea.vmem %s2855_s23, 32  ;;  %p3957_p9 = scmp.lt.s32.totalorder %s2855_s23, %s2855_s23 }
 0x555   :  { %p3953_p8 = scmp.ne.s32.totalorder %s2855_s23, %s3952_s24  ;;  %p3958_p10 = scmp.lt.s32.totalorder %s3952_s24, %s3952_s24 }
 0x557   :  { %p3959_p11 = por %p3958_p10, %p3957_p9 }
 0x559   :  { %p3960_p12 = pnand %p3959_p11, %p3953_p8 }
 0x55c   :  { %v2793_v44 = vpop.xlane.xlu0 %2792  ;;  %v3769_v46 = vpop.eup %3768 }
 0x55d   :  { %3770 = vlog2.f32 %v2793_v44  ;;  %v2773_v49 = vmul.f32 0.6931472, %v3769_v46 }
 0x55f   :  { %v2774_v11 = vadd.f32 %v2773_v49, %v4269_v5 }
 0x560   :  { %v2814_v45 = vpop.xlane.xlu1 %2813 }
 0x561   :  { %3772 = vlog2.f32 %v2814_v45  ;;  %v2775_v53 = vsub.f32 %v4241_v29, %v2774_v11 }
 0x563   :  { %v2776_v16 = vsel %vm2761_vm2, %v2775_v53, 0.0 }
 0x567   :  { %v3771_v9 = vpop.eup %3770 }
 0x568   :  { %v2795_v50 = vmul.f32 0.6931472, %v3771_v9 }
 0x56a   :  { %v2796_v51 = vadd.f32 %v2795_v50, %v4275_v13 }
 0x56b   :  { %v3773_v48 = vpop.eup %3772 }
 0x56c   :  { %v2816_v38 = vmul.f32 0.6931472, %v3773_v48  ;;  %v2797_v54 = vsub.f32 %v4251_v19, %v2796_v51 }
 0x56e   :  { %v2817_v52 = vadd.f32 %v2816_v38, %v4279_v17  ;;  %v2798_v20 = vsel %vm2761_vm2, %v2797_v54, 0.0 }
 0x570   :  { %v2818_v55 = vsub.f32 %v4257_v57, %v2817_v52 }
 0x572   :  { %v2819_v62 = vsel %vm2761_vm2, %v2818_v55, 0.0 }
 0x5a9   :  { %v2801_v47 = vpop.permute.xlu0 %2800  ;;  %v2780_v37 = vpop.permute.xlu1 %2779 }
 0x5aa   :  { %v2782_v60 = vmul.f32 %v2780_v37, %v2776_v16  ;;  %v2803_v61 = vmul.f32 %v2801_v47, %v2798_v20 }
 0x5ac   :  { %v2804_v1 = vadd.f32 %v2803_v61, %v2782_v60 }
 0x5ae   :  { %v2822_v58 = vpop.permute.xlu1 %2821 }
 0x5af   :  { %v2824_v29 = vmul.f32 %v2822_v58, %v2819_v62 }
 0x5b1   :  { %v2825_v3 = vadd.f32 %v2824_v29, %v2804_v1 }
 0x5b3   :  { %v2843_v57 = vpop.permute.xlu1 %2842 }
 0x5d6   :  { %v2835_v35 = vpop.xlane.xlu0 %2834 }
 0x5d7   :  { %3774 = vlog2.f32 %v2835_v35 }
 0x5e1   :  { %v3775_v56 = vpop.eup %3774 }
 0x5e2   :  { %v2837_v59 = vmul.f32 0.6931472, %v3775_v56 }
 0x5e4   :  { %v2838_v63 = vadd.f32 %v2837_v59, %v2829_v34 }
 0x5e6   :  { %v2839_v19 = vsub.f32 %v4265_v0, %v2838_v63 }
 0x5e8   :  { %v2840_v2 = vsel %vm2761_vm2, %v2839_v19, 0.0 }
 0x5e9   :  { %v2845_v4 = vmul.f32 %v2843_v57, %v2840_v2 }
 0x5eb   :  { %v2846_v5 = vadd.f32 %v2845_v4, %v2825_v3 }
 0x5ed   :  { %2847 = vst [vmem:[#allocation14] sm:$0x3] %v2846_v5 }
 0x5ee   :  { %3963 = shalt.err (!%p3960_p12)
}
 0x5ef   :  { %s3964_s29 = scalar_lea.hbm %s4335_s9, 32 }
 0x5f0   :  { %p3965_p13 = scmp.ne.s32.totalorder %s4335_s9, %s3964_s29  ;;  %p3968_p0 = scmp.lt.u32.totalorder %s3964_s29, %s4335_s9 }
 0x5f2   :  { %p3970_p1 = pnand %p3968_p0, %p3965_p13 }
 0x5f4   :  { %3973 = shalt.err (!%p3970_p1)
}
 0x5f5   :  { %2857 = dma.vmem_to_hbm [thread:$0]  %s2855_s23, 32, %s4335_s9, [#allocation4]  }
 0x5f6   :  { %3982 = dma.done.wait [#allocation4], 32  }
 0x5f7   :  { %3983 = vsyncadd [#allocation4], 4294967264 }
 0x5f8   :  { %3984 = dma.done.wait [#allocation16], 32  }
 0x5f9   :  { %3985 = vsyncadd [#allocation16], 4294967264 }
 0x5fa   :  { %2874 = vsyncpa [#allocation3], 1 }
 0x5fb   :  { %2875 = vsyncpa [#allocation6], 1 }
 0x5fc   :  { %2876 = vsyncpa [#allocation9], 1 }
 0x5fd   :  { %2877 = vsyncpa [#allocation12], 1 }
 0x5fe   :  { %2878 = vsyncpa [#allocation4], 1 }
 0x5ff   :  { %2879 = vsyncpa [#allocation16], 1 }

</bundles_post_ra>
